<compile_context>
chip_gen: v7x
topology: tpu7x:2x2x1
jax: 0.10.0
libtpu: 0.0.40
codegen_flags: <defaults>
</compile_context>

<pallas_src>
import functools

import jax
import jax.numpy as jnp
from jax.experimental import pallas as pl
from jax.experimental.pallas import tpu as pltpu

IN_DIM = 100   # nn.Linear(100, hln)
HLN = 300      # hidden width of the module

IN_PAD = 128   # 100 padded to 1 * 128 lanes
HID_PAD = 384  # 300 padded to 3 * 128 lanes


def _round_up(x, m):
    return (x + m - 1) // m * m


def _mlp_kernel(x_ref, w1_ref, b1_ref, w2_ref, b2_ref, w3_ref, b3_ref, o_ref):
    """Fused (Linear -> ReLU) x 3 on one batch tile; all operands in VMEM."""
    x = x_ref[...]

    h = jnp.dot(x, w1_ref[...], preferred_element_type=jnp.float32) + b1_ref[...]
    h = jnp.maximum(h, 0.0)

    # Cast back to the weight dtype so bf16 runs stay bf16 on the MXU (no-op for f32).
    h = h.astype(w2_ref.dtype)
    h = jnp.dot(h, w2_ref[...], preferred_element_type=jnp.float32) + b2_ref[...]
    h = jnp.maximum(h, 0.0)

    h = h.astype(w3_ref.dtype)
    h = jnp.dot(h, w3_ref[...], preferred_element_type=jnp.float32) + b3_ref[...]
    h = jnp.maximum(h, 0.0)

    o_ref[...] = h.astype(o_ref.dtype)


def prepare_params(params, compute_dtype=jnp.float32):
    """Zero-pad weights/biases to lane-aligned shapes, cast weights to compute dtype.

    Done ONCE per set of weights (hoisted out of the per-batch forward).
    """
    def pad2(a, rows, cols):
        return jnp.pad(a, ((0, rows - a.shape[0]), (0, cols - a.shape[1])))

    w1 = pad2(params["w1"], IN_PAD, HID_PAD).astype(compute_dtype)
    w2 = pad2(params["w2"], HID_PAD, HID_PAD).astype(compute_dtype)
    w3 = pad2(params["w3"], HID_PAD, HID_PAD).astype(compute_dtype)
    # Biases are added to the f32 accumulator -> keep f32.
    b1 = pad2(params["b1"], 1, HID_PAD).astype(jnp.float32)
    b2 = pad2(params["b2"], 1, HID_PAD).astype(jnp.float32)
    b3 = pad2(params["b3"], 1, HID_PAD).astype(jnp.float32)
    return (w1, b1, w2, b2, w3, b3)


@functools.partial(jax.jit, static_argnames=("tile_m",))
def mlp_forward(x, padded_params, *, tile_m=256):
    """Runs the fused MLP Pallas kernel.

    x:             [B, 100] float32 (any B >= 1; ragged batches padded internally)
    padded_params: output of prepare_params(...)
    returns        [B, 300] float32
    """
    w1, b1, w2, b2, w3, b3 = padded_params
    B, D = x.shape
    assert D == IN_DIM
    compute_dtype = w1.dtype

    # Batch tile: whole (8-aligned) batch for small B, else tile_m rounded to a
    # sublane multiple. Batch is zero-padded to a tile multiple; padded rows are
    # sliced off at the end (they are garbage-free: zeros in -> finite out).
    tile = _round_up(min(tile_m, _round_up(B, 8)), 8)
    b_pad = _round_up(B, tile)
    grid = (b_pad // tile,)

    x_p = jnp.pad(x, ((0, b_pad - B), (0, IN_PAD - D))).astype(compute_dtype)

    x_spec = pl.BlockSpec((tile, IN_PAD), lambda i: (i, 0))
    out_spec = pl.BlockSpec((tile, HID_PAD), lambda i: (i, 0))
    # Weights/biases: full (un-tiled) blocks with a constant index_map -> DMA'd
    # once into VMEM and reused by every batch tile.
    full = lambda a: pl.BlockSpec(a.shape, lambda i: (0, 0))

    out_full = pl.pallas_call(
        _mlp_kernel,
        out_shape=jax.ShapeDtypeStruct((b_pad, HID_PAD), jnp.float32),
        grid_spec=pltpu.PrefetchScalarGridSpec(
            num_scalar_prefetch=0,
            grid=grid,
            in_specs=[
                x_spec,
                full(w1), full(b1),
                full(w2), full(b2),
                full(w3), full(b3),
            ],
            out_specs=out_spec,
        ),
        compiler_params=pltpu.CompilerParams(
            dimension_semantics=("parallel",),  # megacore batch sharding on v7x
        ),
    )(x_p, w1, b1, w2, b2, w3, b3)

    return out_full[:B, :HLN]


def init_params(key):
    """Deterministic init mimicking PyTorch Linear default U(-1/sqrt(fan_in), +)."""
    ks = jax.random.split(key, 6)

    def linear(kw, kb, fan_in, fan_out):
        bound = 1.0 / jnp.sqrt(jnp.float32(fan_in))
        w = jax.random.uniform(kw, (fan_in, fan_out), jnp.float32, -bound, bound)
        b = jax.random.uniform(kb, (1, fan_out), jnp.float32, -bound, bound)
        return w, b

    w1, b1 = linear(ks[0], ks[1], IN_DIM, HLN)
    w2, b2 = linear(ks[2], ks[3], HLN, HLN)
    w3, b3 = linear(ks[4], ks[5], HLN, HLN)
    return {"w1": w1, "b1": b1, "w2": w2, "b2": b2, "w3": w3, "b3": b3}


def mlp_reference(x, p):
    h = jnp.maximum(x @ p["w1"] + p["b1"], 0.0)
    h = jnp.maximum(h @ p["w2"] + p["b2"], 0.0)
    h = jnp.maximum(h @ p["w3"] + p["b3"], 0.0)
    return h


if __name__ == "__main__":
    key = jax.random.PRNGKey(0)
    kx, kp = jax.random.split(key)

    batch = 13  # deliberately ragged to exercise the batch-padding path
    x = jax.random.normal(kx, (batch, IN_DIM), dtype=jnp.float32)
    params = init_params(kp)
    ref = mlp_reference(x, params)

    # f32 path, single whole-batch tile (batch padded 13 -> 16).
    p_f32 = prepare_params(params, jnp.float32)
    out = jax.block_until_ready(mlp_forward(x, p_f32))
    assert out.shape == (batch, HLN), out.shape
    assert jnp.allclose(out, ref, atol=2e-3, rtol=2e-3), "f32 mismatch vs reference"

    # Multi-tile path (tile=8, grid=(2,)) to exercise grid indexing.
    out_tiled = jax.block_until_ready(mlp_forward(x, p_f32, tile_m=8))
    assert jnp.allclose(out_tiled, ref, atol=2e-3, rtol=2e-3), "tiled mismatch vs reference"

    # bf16 MXU-operand path (f32 accumulation) — looser tolerance vs f32 reference.
    p_bf16 = prepare_params(params, jnp.bfloat16)
    out_bf16 = jax.block_until_ready(mlp_forward(x, p_bf16))
    assert jnp.allclose(out_bf16, ref, atol=1e-1, rtol=1e-1), "bf16 mismatch vs reference"

    print("KERNEL_OK")
</pallas_src>

<mosaic_0001>
module attributes {stable_mosaic.version = 11 : i64} {
  func.func @_mlp_kernel(%arg0: i32, %arg1: memref<16x128xf32, #tpu.memory_space<vmem>>, %arg2: memref<128x384xf32, #tpu.memory_space<vmem>>, %arg3: memref<1x384xf32, #tpu.memory_space<vmem>>, %arg4: memref<384x384xf32, #tpu.memory_space<vmem>>, %arg5: memref<1x384xf32, #tpu.memory_space<vmem>>, %arg6: memref<384x384xf32, #tpu.memory_space<vmem>>, %arg7: memref<1x384xf32, #tpu.memory_space<vmem>>, %arg8: memref<16x384xf32, #tpu.memory_space<vmem>>) attributes {dimension_semantics = [#tpu.dimension_semantics<parallel>], iteration_bounds = array<i64: 1>, scalar_prefetch = 0 : i64, scratch_operands = 0 : i64, tpu.core_type = #tpu.core_type<tc>, window_params = [{transform_indices = @transform_0, window_bounds = array<i64: 16, 128>}, {pipeline_mode = #tpu.pipeline_mode<synchronous>, transform_indices = @transform_1, window_bounds = array<i64: 128, 384>}, {pipeline_mode = #tpu.pipeline_mode<synchronous>, transform_indices = @transform_2, window_bounds = array<i64: 1, 384>}, {pipeline_mode = #tpu.pipeline_mode<synchronous>, transform_indices = @transform_3, window_bounds = array<i64: 384, 384>}, {pipeline_mode = #tpu.pipeline_mode<synchronous>, transform_indices = @transform_4, window_bounds = array<i64: 1, 384>}, {pipeline_mode = #tpu.pipeline_mode<synchronous>, transform_indices = @transform_5, window_bounds = array<i64: 384, 384>}, {pipeline_mode = #tpu.pipeline_mode<synchronous>, transform_indices = @transform_6, window_bounds = array<i64: 1, 384>}, {transform_indices = @transform_7, window_bounds = array<i64: 16, 384>}]} {
    %c0 = arith.constant 0 : index
    %c0_0 = arith.constant 0 : index
    %0 = vector.load %arg1[%c0, %c0_0] : memref<16x128xf32, #tpu.memory_space<vmem>>, vector<16x128xf32>
    %c0_1 = arith.constant 0 : index
    %c0_2 = arith.constant 0 : index
    %1 = vector.load %arg2[%c0_1, %c0_2] : memref<128x384xf32, #tpu.memory_space<vmem>>, vector<128x384xf32>
    %cst = arith.constant dense<0.000000e+00> : vector<16x384xf32>
    %2 = tpu.matmul %0, %1, %cst {dimension_numbers = #tpu.dot_dimension_numbers<[1], [0], [0], [1], [0, 0, 1, 1], [], []>} : vector<16x128xf32>, vector<128x384xf32>, vector<16x384xf32> -> vector<16x384xf32>
    %c0_3 = arith.constant 0 : index
    %c0_4 = arith.constant 0 : index
    %3 = vector.load %arg3[%c0_3, %c0_4] : memref<1x384xf32, #tpu.memory_space<vmem>>, vector<1x384xf32>
    %4 = vector.broadcast %3 : vector<1x384xf32> to vector<16x384xf32>
    %5 = arith.addf %2, %4 : vector<16x384xf32>
    %cst_5 = arith.constant 0.000000e+00 : f32
    %6 = vector.broadcast %cst_5 : f32 to vector<16x384xf32>
    %7 = arith.maximumf %5, %6 : vector<16x384xf32>
    %c0_6 = arith.constant 0 : index
    %c0_7 = arith.constant 0 : index
    %8 = vector.load %arg4[%c0_6, %c0_7] : memref<384x384xf32, #tpu.memory_space<vmem>>, vector<384x384xf32>
    %cst_8 = arith.constant dense<0.000000e+00> : vector<16x384xf32>
    %9 = tpu.matmul %7, %8, %cst_8 {dimension_numbers = #tpu.dot_dimension_numbers<[1], [0], [0], [1], [0, 0, 1, 1], [], []>} : vector<16x384xf32>, vector<384x384xf32>, vector<16x384xf32> -> vector<16x384xf32>
    %c0_9 = arith.constant 0 : index
    %c0_10 = arith.constant 0 : index
    %10 = vector.load %arg5[%c0_9, %c0_10] : memref<1x384xf32, #tpu.memory_space<vmem>>, vector<1x384xf32>
    %11 = vector.broadcast %10 : vector<1x384xf32> to vector<16x384xf32>
    %12 = arith.addf %9, %11 : vector<16x384xf32>
    %cst_11 = arith.constant 0.000000e+00 : f32
    %13 = vector.broadcast %cst_11 : f32 to vector<16x384xf32>
    %14 = arith.maximumf %12, %13 : vector<16x384xf32>
    %c0_12 = arith.constant 0 : index
    %c0_13 = arith.constant 0 : index
    %15 = vector.load %arg6[%c0_12, %c0_13] : memref<384x384xf32, #tpu.memory_space<vmem>>, vector<384x384xf32>
    %cst_14 = arith.constant dense<0.000000e+00> : vector<16x384xf32>
    %16 = tpu.matmul %14, %15, %cst_14 {dimension_numbers = #tpu.dot_dimension_numbers<[1], [0], [0], [1], [0, 0, 1, 1], [], []>} : vector<16x384xf32>, vector<384x384xf32>, vector<16x384xf32> -> vector<16x384xf32>
    %c0_15 = arith.constant 0 : index
    %c0_16 = arith.constant 0 : index
    %17 = vector.load %arg7[%c0_15, %c0_16] : memref<1x384xf32, #tpu.memory_space<vmem>>, vector<1x384xf32>
    %18 = vector.broadcast %17 : vector<1x384xf32> to vector<16x384xf32>
    %19 = arith.addf %16, %18 : vector<16x384xf32>
    %cst_17 = arith.constant 0.000000e+00 : f32
    %20 = vector.broadcast %cst_17 : f32 to vector<16x384xf32>
    %21 = arith.maximumf %19, %20 : vector<16x384xf32>
    %c0_18 = arith.constant 0 : index
    %c0_19 = arith.constant 0 : index
    %22 = vector.load %arg8[%c0_18, %c0_19] : memref<16x384xf32, #tpu.memory_space<vmem>>, vector<16x384xf32>
    tpu.vector_store %arg8[%c0_18, %c0_19], %21 {strides = array<i32>} : memref<16x384xf32, #tpu.memory_space<vmem>>, vector<16x384xf32>,
    return
  }
  func.func @transform_0(%arg0: i32) -> (i32, i32) {
    %c0_i32 = arith.constant 0 : i32
    %c0_i32_0 = arith.constant 0 : i32
    return %arg0, %c0_i32 : i32, i32
  }
  func.func @transform_1(%arg0: i32) -> (i32, i32) {
    %c0_i32 = arith.constant 0 : i32
    %c0_i32_0 = arith.constant 0 : i32
    %c0_i32_1 = arith.constant 0 : i32
    return %c0_i32, %c0_i32_0 : i32, i32
  }
  func.func @transform_2(%arg0: i32) -> (i32, i32) {
    %c0_i32 = arith.constant 0 : i32
    %c0_i32_0 = arith.constant 0 : i32
    %c0_i32_1 = arith.constant 0 : i32
    return %c0_i32, %c0_i32_0 : i32, i32
  }
  func.func @transform_3(%arg0: i32) -> (i32, i32) {
    %c0_i32 = arith.constant 0 : i32
    %c0_i32_0 = arith.constant 0 : i32
    %c0_i32_1 = arith.constant 0 : i32
    return %c0_i32, %c0_i32_0 : i32, i32
  }
  func.func @transform_4(%arg0: i32) -> (i32, i32) {
    %c0_i32 = arith.constant 0 : i32
    %c0_i32_0 = arith.constant 0 : i32
    %c0_i32_1 = arith.constant 0 : i32
    return %c0_i32, %c0_i32_0 : i32, i32
  }
  func.func @transform_5(%arg0: i32) -> (i32, i32) {
    %c0_i32 = arith.constant 0 : i32
    %c0_i32_0 = arith.constant 0 : i32
    %c0_i32_1 = arith.constant 0 : i32
    return %c0_i32, %c0_i32_0 : i32, i32
  }
  func.func @transform_6(%arg0: i32) -> (i32, i32) {
    %c0_i32 = arith.constant 0 : i32
    %c0_i32_0 = arith.constant 0 : i32
    %c0_i32_1 = arith.constant 0 : i32
    return %c0_i32, %c0_i32_0 : i32, i32
  }
  func.func @transform_7(%arg0: i32) -> (i32, i32) {
    %c0_i32 = arith.constant 0 : i32
    %c0_i32_0 = arith.constant 0 : i32
    return %arg0, %c0_i32 : i32, i32
  }
}

</mosaic_0001>

<bundles_post_ra>
// kernel: mlp_forward.1
= control target key start
LH: loop header
LB: loop body
LE: loop exit
PB: predicated region body
PF: predicated region fallthrough
CT: control target
= control target key end

     0   :  { %12 = vsyncpa [#allocation3], 0  ;;  %s2173_s0 = inlined_call_operand.vmem [shape: f32[16,128], index: 0, kind: input, shape index: {}]   ;;  %s2174_s1 = inlined_call_operand.hbm [shape: f32[128,384], index: 1, kind: input, shape index: {}]   ;;  %s2175_s2 = inlined_call_operand.vmem [shape: f32[1,384], index: 2, kind: input, shape index: {}]   ;;  %s2176_s3 = inlined_call_operand.hbm [shape: f32[384,384], index: 3, kind: input, shape index: {}]   ;;  %s2177_s4 = inlined_call_operand.vmem [shape: f32[1,384], index: 4, kind: input, shape index: {}]   ;;  %s2178_s5 = inlined_call_operand.hbm [shape: f32[384,384], index: 5, kind: input, shape index: {}]   ;;  %s2179_s6 = inlined_call_operand.vmem [shape: f32[1,384], index: 6, kind: input, shape index: {}]   ;;  %s2180_s7 = inlined_call_operand.hbm [shape: f32[16,384], index: 7, kind: output, shape index: {}]  }
   0x1   :  { %13 = vsyncpa [#allocation6], 0 }
   0x2   :  { %14 = vsyncpa [#allocation4], 0  ;;  %s1995_s24 = smov [#allocation5]   ;;  %s1996_s26 = smov [#allocation2]  }
   0x3   :  { %s36_s25 = sshll.u32 %s1995_s24, 4  ;;  %s22_s27 = sshll.u32 %s1996_s26, 4  ;;  %s37_s25 = int_to_ptr.vmem [resolvable:$true] %s36_s25  ;;  %s2042_s27 = int_to_ptr.vmem [resolvable:$true] %s22_s27 }
   0x4   :  { %s1901_s30 = scalar_lea.hbm %s2176_s3, 18432 }
   0x5   :  { %p1902_p0 = scmp.ne.s32.totalorder %s2176_s3, %s1901_s30  ;;  %p1905_p1 = scmp.lt.u32.totalorder %s1901_s30, %s2176_s3 }
   0x7   :  { %p1907_p2 = pnand %p1905_p1, %p1902_p0 }
   0x9   :  { %1910 = shalt.err (!%p1907_p2)
}
   0xa   :  { %s1911_s12 = scalar_lea.vmem %s37_s25, 18432  ;;  %p1916_p4 = scmp.lt.s32.totalorder %s37_s25, %s37_s25 }
   0xb   :  { %p1912_p3 = scmp.ne.s32.totalorder %s37_s25, %s1911_s12  ;;  %p1917_p5 = scmp.lt.s32.totalorder %s1911_s12, %s1911_s12 }
   0xd   :  { %p1918_p6 = por %p1917_p5, %p1916_p4 }
   0xf   :  { %p1919_p7 = pnand %p1918_p6, %p1912_p3 }
  0x11   :  { %1922 = shalt.err (!%p1919_p7)
}
  0x12   :  { %s1997_s13 = smov 384   ;;  %s1998_s14 = smov 24  }
  0x13   :  { %42 = dma.hbm_to_vmem [thread:$0]  %s2176_s3, 18432, %s37_s25, [#allocation6], %s1997_s13, %s1997_s13, %s1998_s14  }
  0x14   :  { %s1923_s19 = scalar_lea.hbm %s2174_s1, 6144 }
  0x15   :  { %p1924_p8 = scmp.ne.s32.totalorder %s2174_s1, %s1923_s19  ;;  %p1927_p9 = scmp.lt.u32.totalorder %s1923_s19, %s2174_s1 }
  0x17   :  { %p1929_p10 = pnand %p1927_p9, %p1924_p8 }
  0x19   :  { %1932 = shalt.err (!%p1929_p10)
}
  0x1a   :  { %s1933_s24 = scalar_lea.vmem %s2042_s27, 6144  ;;  %p1938_p12 = scmp.lt.s32.totalorder %s2042_s27, %s2042_s27 }
  0x1b   :  { %p1934_p11 = scmp.ne.s32.totalorder %s2042_s27, %s1933_s24  ;;  %p1939_p13 = scmp.lt.s32.totalorder %s1933_s24, %s1933_s24 }
  0x1d   :  { %p1940_p0 = por %p1939_p13, %p1938_p12 }
  0x1f   :  { %p1941_p1 = pnand %p1940_p0, %p1934_p11 }
  0x21   :  { %1944 = shalt.err (!%p1941_p1)
}
  0x22   :  { %28 = dma.hbm_to_vmem [thread:$0]  %s2174_s1, 6144, %s2042_s27, [#allocation3], %s1997_s13, %s1997_s13, %s1998_s14  }
  0x23   :  { %s1999_s26 = smov [#allocation7]   ;;  %s1945_s8 = scalar_lea.hbm %s2178_s5, 18432 }
  0x24   :  { %s50_s28 = sshll.u32 %s1999_s26, 4  ;;  %p1946_p2 = scmp.ne.s32.totalorder %s2178_s5, %s1945_s8  ;;  %s51_s28 = int_to_ptr.vmem [resolvable:$true] %s50_s28 }
  0x25   :  { %p1949_p3 = scmp.lt.u32.totalorder %s1945_s8, %s2178_s5 }
  0x27   :  { %p1951_p4 = pnand %p1949_p3, %p1946_p2 }
  0x29   :  { %1954 = shalt.err (!%p1951_p4)
}
  0x2a   :  { %s1955_s15 = scalar_lea.vmem %s51_s28, 18432  ;;  %p1960_p6 = scmp.lt.s32.totalorder %s51_s28, %s51_s28 }
  0x2b   :  { %p1956_p5 = scmp.ne.s32.totalorder %s51_s28, %s1955_s15  ;;  %p1961_p7 = scmp.lt.s32.totalorder %s1955_s15, %s1955_s15 }
  0x2d   :  { %p1962_p8 = por %p1961_p7, %p1960_p6 }
  0x2f   :  { %p1963_p9 = pnand %p1962_p8, %p1956_p5 }
  0x31   :  { %1966 = shalt.err (!%p1963_p9)
}
  0x32   :  { %56 = dma.hbm_to_vmem [thread:$0]  %s2178_s5, 18432, %s51_s28, [#allocation6], %s1997_s13, %s1997_s13, %s1998_s14  }
  0x33   :  { %1989 = dma.done.wait [#allocation3], 6144  }
  0x34   :  { %1990 = vsyncadd [#allocation3], 4294961152 }
  0x35   :  { %1991 = dma.done.wait [#allocation6], 36864  }
  0x36   :  { %1992 = vsyncadd [#allocation6], 4294930432  ;;  %v2000_v0 = vmov 0.0   ;;  %v71_v1 = vld [vmem:[#allocation2 + $0x8] sm:$0xff]  ;;  %v74_v2 = vld [vmem:[#allocation2 + $0x20] sm:$0xff] }
  0x37   :  { %199 = vmatprep.mubr.f32.mxu0 %v2000_v0  ;;  %v70_v3 = vld [vmem:[#allocation2] sm:$0xff]  ;;  %v1494_v4 = vpack.c.bf16 %v74_v2, %v71_v1  ;;  %v73_v5 = vld [vmem:[#allocation2 + $0x18] sm:$0xff]  ;;  %v80_v7 = vld [vmem:[#allocation2 + $0x50] sm:$0xff] }
  0x38   :  { %v77_v6 = vld [vmem:[#allocation2 + $0x38] sm:$0xff]  ;;  %v1496_v8 = vpack.c.bf16 %v73_v5, %v70_v3  ;;  %v76_v10 = vld [vmem:[#allocation2 + $0x30] sm:$0xff]  ;;  %v79_v11 = vld [vmem:[#allocation2 + $0x48] sm:$0xff] }
  0x39   :  { %v1498_v9 = vpack.c.bf16 %v80_v7, %v77_v6  ;;  %v83_v12 = vld [vmem:[#allocation2 + $0x68] sm:$0xff]  ;;  %1495 = vmatprep.subr.bf16.mxu0 %v1494_v4  ;;  %v86_v13 = vld [vmem:[#allocation2 + $0x80] sm:$0xff]  ;;  %v1500_v14 = vpack.c.bf16 %v79_v11, %v76_v10  ;;  %v85_v17 = vld [vmem:[#allocation2 + $0x78] sm:$0xff] }
  0x3a   :  { %1497 = vmatpush1.bf16.msra.mxu0 %v1496_v8  ;;  %v1502_v15 = vpack.c.bf16 %v86_v13, %v83_v12  ;;  %v82_v16 = vld [vmem:[#allocation2 + $0x60] sm:$0xff]  ;;  %v89_v18 = vld [vmem:[#allocation2 + $0x98] sm:$0xff]  ;;  %v92_v19 = vld [vmem:[#allocation2 + $0xb0] sm:$0xff] }
  0x3b   :  { %1499 = vmatprep.subr.bf16.mxu0 %v1498_v9  ;;  %v1504_v20 = vpack.c.bf16 %v85_v17, %v82_v16  ;;  %v1506_v21 = vpack.c.bf16 %v92_v19, %v89_v18  ;;  %v88_v22 = vld [vmem:[#allocation2 + $0x90] sm:$0xff]  ;;  %v91_v23 = vld [vmem:[#allocation2 + $0xa8] sm:$0xff]  ;;  %v98_v25 = vld [vmem:[#allocation2 + $0xe0] sm:$0xff] }
  0x3c   :  { %v95_v24 = vld [vmem:[#allocation2 + $0xc8] sm:$0xff]  ;;  %v72_v26 = vld [vmem:[#allocation2 + $0x10] sm:$0xff]  ;;  %v2098_v28 = vld [vmem:[%s2173_s0] sm:$0xff]  ;;  %v1508_v30 = vpack.c.bf16 %v91_v23, %v88_v22 }
  0x3d   :  { %v75_v27 = vld [vmem:[#allocation2 + $0x28] sm:$0xff]  ;;  %v78_v29 = vld [vmem:[#allocation2 + $0x40] sm:$0xff]  ;;  %v81_v33 = vld [vmem:[#allocation2 + $0x58] sm:$0xff]  ;;  %1421 = vmatprep.mubr.f32.mxu1 %v2098_v28  ;;  %v1510_v34 = vpack.c.bf16 %v98_v25, %v95_v24 }
  0x3e   :  { %1501 = vmatpush1.bf16.msra.mxu0 %v1500_v14  ;;  %v94_v31 = vld [vmem:[#allocation2 + $0xc0] sm:$0xff]  ;;  %v1526_v32 = vpack.c.bf16 %v75_v27, %v72_v26  ;;  %v97_v35 = vld [vmem:[#allocation2 + $0xd8] sm:$0xff]  ;;  %v1530_v36 = vpack.c.bf16 %v81_v33, %v78_v29  ;;  %v84_v37 = vld [vmem:[#allocation2 + $0x70] sm:$0xff] }
  0x3f   :  { %1503 = vmatprep.subr.bf16.mxu0 %v1502_v15  ;;  %v87_v38 = vld [vmem:[#allocation2 + $0x88] sm:$0xff]  ;;  %v101_v39 = vld [vmem:[#allocation2 + $0xf8] sm:$0xff]  ;;  %v104_v40 = vld [vmem:[#allocation2 + $0x110] sm:$0xff]  ;;  %v1512_v41 = vpack.c.bf16 %v97_v35, %v94_v31 }
  0x40   :  { %1527 = vmatprep.subr.bf16.mxu1 %v1526_v32  ;;  %v100_v42 = vld [vmem:[#allocation2 + $0xf0] sm:$0xff]  ;;  %v1534_v43 = vpack.c.bf16 %v87_v38, %v84_v37  ;;  %v1514_v44 = vpack.c.bf16 %v104_v40, %v101_v39  ;;  %v103_v45 = vld [vmem:[#allocation2 + $0x108] sm:$0xff]  ;;  %v90_v46 = vld [vmem:[#allocation2 + $0xa0] sm:$0xff] }
  0x41   :  { %1529 = vmatpush3.bf16.msra.mxu1 %v1526_v32  ;;  %v93_v47 = vld [vmem:[#allocation2 + $0xb8] sm:$0xff]  ;;  %v107_v48 = vld [vmem:[#allocation2 + $0x128] sm:$0xff]  ;;  %v110_v49 = vld [vmem:[#allocation2 + $0x140] sm:$0xff]  ;;  %v1516_v50 = vpack.c.bf16 %v103_v45, %v100_v42 }
  0x42   :  { %1505 = vmatpush1.bf16.msra.mxu0 %v1504_v20  ;;  %1531 = vmatprep.subr.bf16.mxu1 %v1530_v36  ;;  %v106_v51 = vld [vmem:[#allocation2 + $0x120] sm:$0xff]  ;;  %v1538_v52 = vpack.c.bf16 %v93_v47, %v90_v46  ;;  %v1518_v53 = vpack.c.bf16 %v110_v49, %v107_v48  ;;  %v109_v54 = vld [vmem:[#allocation2 + $0x138] sm:$0xff]  ;;  %v96_v55 = vld [vmem:[#allocation2 + $0xd0] sm:$0xff] }
  0x43   :  { %1507 = vmatprep.subr.bf16.mxu0 %v1506_v21  ;;  %v99_v56 = vld [vmem:[#allocation2 + $0xe8] sm:$0xff]  ;;  %v113_v57 = vld [vmem:[#allocation2 + $0x158] sm:$0xff]  ;;  %v116_v58 = vld [vmem:[#allocation2 + $0x170] sm:$0xff]  ;;  %v1520_v59 = vpack.c.bf16 %v109_v54, %v106_v51 }
  0x44   :  { %v112_v60 = vld [vmem:[#allocation2 + $0x150] sm:$0xff]  ;;  %v1542_v61 = vpack.c.bf16 %v99_v56, %v96_v55  ;;  %v1522_v62 = vpack.c.bf16 %v116_v58, %v113_v57  ;;  %v115_v63 = vld [vmem:[#allocation2 + $0x168] sm:$0xff]  ;;  %v102_v1 = vld [vmem:[#allocation2 + $0x100] sm:$0xff] }
  0x45   :  { %1533 = vmatpush3.bf16.msra.mxu1 %v1530_v36  ;;  %v105_v2 = vld [vmem:[#allocation2 + $0x118] sm:$0xff]  ;;  %v294_v3 = vld [vmem:[#allocation5 + $0x8] sm:$0xff]  ;;  %v297_v4 = vld [vmem:[#allocation5 + $0x20] sm:$0xff]  ;;  %v1524_v5 = vpack.c.bf16 %v115_v63, %v112_v60 }
  0x46   :  { %1509 = vmatpush1.bf16.msra.mxu0 %v1508_v30  ;;  %1535 = vmatprep.subr.bf16.mxu1 %v1534_v43  ;;  %v1546_v6 = vpack.c.bf16 %v105_v2, %v102_v1  ;;  %v108_v7 = vld [vmem:[#allocation2 + $0x130] sm:$0xff]  ;;  %v111_v8 = vld [vmem:[#allocation2 + $0x148] sm:$0xff]  ;;  %v1558_v9 = vpack.c.bf16 %v297_v4, %v294_v3  ;;  %v293_v10 = vld [vmem:[#allocation5] sm:$0xff] }
  0x47   :  { %1511 = vmatprep.subr.bf16.mxu0 %v1510_v34  ;;  %v296_v11 = vld [vmem:[#allocation5 + $0x18] sm:$0xff]  ;;  %v303_v13 = vld [vmem:[#allocation5 + $0x50] sm:$0xff]  ;;  %v1550_v14 = vpack.c.bf16 %v111_v8, %v108_v7  ;;  %v114_v15 = vld [vmem:[#allocation2 + $0x160] sm:$0xff] }
  0x48   :  { %v300_v12 = vld [vmem:[#allocation5 + $0x38] sm:$0xff]  ;;  %v1560_v17 = vpack.c.bf16 %v296_v11, %v293_v10  ;;  %v299_v19 = vld [vmem:[#allocation5 + $0x30] sm:$0xff]  ;;  %v302_v20 = vld [vmem:[#allocation5 + $0x48] sm:$0xff] }
  0x49   :  { %1537 = vmatpush3.bf16.msra.mxu1 %v1534_v43  ;;  %v117_v16 = vld [vmem:[#allocation2 + $0x178] sm:$0xff]  ;;  %v1562_v18 = vpack.c.bf16 %v303_v13, %v300_v12  ;;  %v306_v21 = vld [vmem:[#allocation5 + $0x68] sm:$0xff]  ;;  %v309_v22 = vld [vmem:[#allocation5 + $0x80] sm:$0xff]  ;;  %v1564_v25 = vpack.c.bf16 %v302_v20, %v299_v19 }
  0x4a   :  { %1513 = vmatpush1.bf16.msra.mxu0 %v1512_v41  ;;  %1539 = vmatprep.subr.bf16.mxu1 %v1538_v52  ;;  %v69_v23 = vld [vmem:[%s2173_s0 + $0x8] sm:$0xff]  ;;  %v1554_v24 = vpack.c.bf16 %v117_v16, %v114_v15  ;;  %v343_v26 = vld [vmem:[#allocation5 + $0x190] sm:$0xff]  ;;  %v1566_v29 = vpack.c.bf16 %v309_v22, %v306_v21  ;;  %v305_v30 = vld [vmem:[#allocation5 + $0x60] sm:$0xff] }
  0x4b   :  { %1515 = vmatprep.subr.bf16.mxu0 %v1514_v44  ;;  %v346_v27 = vld [vmem:[#allocation5 + $0x1a8] sm:$0xff]  ;;  %v308_v31 = vld [vmem:[#allocation5 + $0x78] sm:$0xff]  ;;  %v315_v32 = vld [vmem:[#allocation5 + $0xb0] sm:$0xff] }
  0x4c   :  { %v1654_v33 = vpack.c.bf16 %v346_v27, %v343_v26  ;;  %v295_v34 = vld [vmem:[#allocation5 + $0x10] sm:$0xff]  ;;  %v298_v35 = vld [vmem:[#allocation5 + $0x28] sm:$0xff]  ;;  %v1568_v36 = vpack.c.bf16 %v308_v31, %v305_v30  ;;  %v349_v37 = vld [vmem:[#allocation5 + $0x1c0] sm:$0xff] }
  0x4d   :  { %1541 = vmatpush3.bf16.msra.mxu1 %v1538_v52  ;;  %v352_v38 = vld [vmem:[#allocation5 + $0x1d8] sm:$0xff]  ;;  %v311_v40 = vld [vmem:[#allocation5 + $0x90] sm:$0xff]  ;;  %v314_v41 = vld [vmem:[#allocation5 + $0xa8] sm:$0xff]  ;;  %v1656_v44 = vpack.c.bf16 %v298_v35, %v295_v34 }
  0x4e   :  { %1517 = vmatpush1.bf16.msra.mxu0 %v1516_v50  ;;  %1543 = vmatprep.subr.bf16.mxu1 %v1542_v61  ;;  %v318_v42 = vld [vmem:[#allocation5 + $0xc8] sm:$0xff]  ;;  %v321_v43 = vld [vmem:[#allocation5 + $0xe0] sm:$0xff]  ;;  %v1658_v45 = vpack.c.bf16 %v352_v38, %v349_v37  ;;  %v304_v47 = vld [vmem:[#allocation5 + $0x58] sm:$0xff]  ;;  %v1572_v48 = vpack.c.bf16 %v314_v41, %v311_v40 }
  0x4f   :  { %1519 = vmatprep.subr.bf16.mxu0 %v1518_v53  ;;  %v301_v46 = vld [vmem:[#allocation5 + $0x40] sm:$0xff]  ;;  %v355_v49 = vld [vmem:[#allocation5 + $0x1f0] sm:$0xff]  ;;  %v358_v50 = vld [vmem:[#allocation5 + $0x208] sm:$0xff]  ;;  %v1574_v51 = vpack.c.bf16 %v321_v43, %v318_v42 }
  0x50   :  { %v317_v52 = vld [vmem:[#allocation5 + $0xc0] sm:$0xff]  ;;  %v320_v53 = vld [vmem:[#allocation5 + $0xd8] sm:$0xff]  ;;  %v327_v55 = vld [vmem:[#allocation5 + $0x110] sm:$0xff]  ;;  %v1660_v56 = vpack.c.bf16 %v304_v47, %v301_v46  ;;  %v1662_v57 = vpack.c.bf16 %v358_v50, %v355_v49 }
  0x51   :  { %1545 = vmatpush3.bf16.msra.mxu1 %v1542_v61  ;;  %v324_v54 = vld [vmem:[#allocation5 + $0xf8] sm:$0xff]  ;;  %v307_v58 = vld [vmem:[#allocation5 + $0x70] sm:$0xff]  ;;  %v1576_v60 = vpack.c.bf16 %v320_v53, %v317_v52  ;;  %v361_v61 = vld [vmem:[#allocation5 + $0x220] sm:$0xff] }
  0x52   :  { %1521 = vmatpush1.bf16.msra.mxu0 %v1520_v59  ;;  %1547 = vmatprep.subr.bf16.mxu1 %v1546_v6  ;;  %v310_v59 = vld [vmem:[#allocation5 + $0x88] sm:$0xff]  ;;  %v1578_v63 = vpack.c.bf16 %v327_v55, %v324_v54  ;;  %v323_v1 = vld [vmem:[#allocation5 + $0xf0] sm:$0xff]  ;;  %v333_v4 = vld [vmem:[#allocation5 + $0x140] sm:$0xff] }
  0x53   :  { %1523 = vmatprep.subr.bf16.mxu0 %v1522_v62  ;;  %v364_v62 = vld [vmem:[#allocation5 + $0x238] sm:$0xff]  ;;  %v326_v2 = vld [vmem:[#allocation5 + $0x108] sm:$0xff]  ;;  %v313_v7 = vld [vmem:[#allocation5 + $0xa0] sm:$0xff] }
  0x54   :  { %v330_v3 = vld [vmem:[#allocation5 + $0x128] sm:$0xff]  ;;  %v316_v8 = vld [vmem:[#allocation5 + $0xb8] sm:$0xff]  ;;  %v367_v10 = vld [vmem:[#allocation5 + $0x250] sm:$0xff] }
  0x55   :  { %1549 = vmatpush3.bf16.msra.mxu1 %v1546_v6  ;;  %v1666_v6 = vpack.c.bf16 %v364_v62, %v361_v61  ;;  %v370_v11 = vld [vmem:[#allocation5 + $0x268] sm:$0xff]  ;;  %v1582_v12 = vpack.c.bf16 %v333_v4, %v330_v3  ;;  %v329_v13 = vld [vmem:[#allocation5 + $0x120] sm:$0xff]  ;;  %v336_v15 = vld [vmem:[#allocation5 + $0x158] sm:$0xff] }
  0x56   :  { %1525 = vmatpush1.bf16.msra.mxu0 %v1524_v5  ;;  %1551 = vmatprep.subr.bf16.mxu1 %v1550_v14  ;;  %v1664_v5 = vpack.c.bf16 %v310_v59, %v307_v58  ;;  %v339_v16 = vld [vmem:[#allocation5 + $0x170] sm:$0xff]  ;;  %v322_v20 = vld [vmem:[#allocation5 + $0xe8] sm:$0xff]  ;;  %v373_v22 = vld [vmem:[#allocation5 + $0x280] sm:$0xff] }
  0x57   :  { %1559 = vmatprep.subr.bf16.mxu0 %v1558_v9  ;;  %v1580_v9 = vpack.c.bf16 %v326_v2, %v323_v1  ;;  %v319_v19 = vld [vmem:[#allocation5 + $0xd0] sm:$0xff]  ;;  %v338_v26 = vld [vmem:[#allocation5 + $0x168] sm:$0xff]  ;;  %v341_v37 = vld [vmem:[#allocation5 + $0x180] sm:$0xff] }
  0x58   :  { %v342_v27 = vld [vmem:[#allocation5 + $0x188] sm:$0xff]  ;;  %v1672_v30 = vpack.c.bf16 %v322_v20, %v319_v19  ;;  %v379_v34 = vld [vmem:[#allocation5 + $0x2b0] sm:$0xff]  ;;  %v344_v38 = vld [vmem:[#allocation5 + $0x198] sm:$0xff] }
  0x59   :  { %200 = vmatmul.mubr.f32.vlgmr.msra.gmra.mrb[0].mxu0 %v2098_v28  ;;  %1553 = vmatpush3.bf16.msra.mxu1 %v1550_v14  ;;  %v312_v28 = vld [vmem:[#allocation5 + $0x98] sm:$0xff]  ;;  %v382_v35 = vld [vmem:[#allocation5 + $0x2c8] sm:$0xff]  ;;  %v351_v40 = vld [vmem:[#allocation5 + $0x1d0] sm:$0xff] }
  0x5a   :  { %205 = vmatprep.mubr.f32.mxu0 %v2000_v0  ;;  %1561 = vmatpush1.bf16.msra.mxu0 %v1560_v17  ;;  %v1570_v39 = vpack.c.bf16 %v315_v32, %v312_v28  ;;  %v332_v14 = vld [vmem:[#allocation5 + $0x138] sm:$0xff]  ;;  %v1668_v17 = vpack.c.bf16 %v316_v8, %v313_v7  ;;  %v325_v28 = vld [vmem:[#allocation5 + $0x100] sm:$0xff]  ;;  %v1678_v42 = vpack.c.bf16 %v382_v35, %v379_v34  ;;  %v331_v43 = vld [vmem:[#allocation5 + $0x130] sm:$0xff] }
  0x5b   :  { %1563 = vmatprep.subr.bf16.mxu0 %v1562_v18  ;;  %1555 = vmatprep.subr.bf16.mxu1 %v1554_v24  ;;  %v1670_v18 = vpack.c.bf16 %v370_v11, %v367_v10  ;;  %v1584_v21 = vpack.c.bf16 %v332_v14, %v329_v13  ;;  %v328_v32 = vld [vmem:[#allocation5 + $0x118] sm:$0xff]  ;;  %v347_v47 = vld [vmem:[#allocation5 + $0x1b0] sm:$0xff]  ;;  %v354_v49 = vld [vmem:[#allocation5 + $0x1e8] sm:$0xff] }
  0x5c   :  { %v1676_v41 = vpack.c.bf16 %v328_v32, %v325_v28  ;;  %v357_v50 = vld [vmem:[#allocation5 + $0x200] sm:$0xff]  ;;  %v356_v55 = vld [vmem:[#allocation5 + $0x1f8] sm:$0xff]  ;;  %v362_v61 = vld [vmem:[#allocation5 + $0x228] sm:$0xff] }
  0x5d   :  { %206 = vmatmul.mubr.f32.gmra.mrb[2].mxu0 %v69_v23  ;;  %1557 = vmatpush3.bf16.msra.mxu1 %v1554_v24  ;;  %v1586_v24 = vpack.c.bf16 %v339_v16, %v336_v15  ;;  %v1598_v53 = vpack.c.bf16 %v357_v50, %v354_v49  ;;  %v353_v54 = vld [vmem:[#allocation5 + $0x1e0] sm:$0xff]  ;;  %v366_v62 = vld [vmem:[#allocation5 + $0x248] sm:$0xff]  ;;  %v368_v4 = vld [vmem:[#allocation5 + $0x258] sm:$0xff] }
  0x5e   :  { %1565 = vmatpush1.bf16.msra.mxu0 %v1564_v25  ;;  %1655 = vmatprep.subr.bf16.mxu1 %v1654_v33  ;;  %v335_v25 = vld [vmem:[#allocation5 + $0x150] sm:$0xff]  ;;  %v1600_v58 = vpack.c.bf16 %v356_v55, %v353_v54  ;;  %v365_v3 = vld [vmem:[#allocation5 + $0x240] sm:$0xff]  ;;  %v374_v10 = vld [vmem:[#allocation5 + $0x288] sm:$0xff] }
  0x5f   :  { %1567 = vmatprep.subr.bf16.mxu0 %v1566_v29  ;;  %v345_v29 = vld [vmem:[#allocation5 + $0x1a0] sm:$0xff]  ;;  %v1588_v33 = vpack.c.bf16 %v338_v26, %v335_v25  ;;  %v1608_v7 = vpack.c.bf16 %v368_v4, %v365_v3  ;;  %v378_v11 = vld [vmem:[#allocation5 + $0x2a8] sm:$0xff]  ;;  %v380_v16 = vld [vmem:[#allocation5 + $0x2b8] sm:$0xff] }
  0x60   :  { %1422 = vmatmul.mubr.f32.vlgmr.msra.gmra.mrb[0].mxu1 %v69_v23  ;;  %v376_v23 = vld [vmem:[#allocation5 + $0x298] sm:$0xff]  ;;  %v377_v15 = vld [vmem:[#allocation5 + $0x2a0] sm:$0xff]  ;;  %v387_v19 = vld [vmem:[#allocation5 + $0x2f0] sm:$0xff] }
  0x61   :  { %1657 = vmatpush3.bf16.msra.mxu1 %v1656_v44  ;;  %v1674_v31 = vpack.c.bf16 %v376_v23, %v373_v22  ;;  %v334_v44 = vld [vmem:[#allocation5 + $0x148] sm:$0xff]  ;;  %v385_v20 = vld [vmem:[#allocation5 + $0x2e0] sm:$0xff]  ;;  %v388_v22 = vld [vmem:[#allocation5 + $0x2f8] sm:$0xff] }
  0x62   :  { %1569 = vmatpush1.bf16.msra.mxu0 %v1568_v36  ;;  %1659 = vmatprep.subr.bf16.mxu1 %v1658_v45  ;;  %v1590_v36 = vpack.c.bf16 %v345_v29, %v342_v27  ;;  %v1592_v45 = vpack.c.bf16 %v344_v38, %v341_v37  ;;  %v383_v23 = vld [vmem:[#allocation5 + $0x2d0] sm:$0xff]  ;;  %v1682_v25 = vpack.c.bf16 %v388_v22, %v385_v20  ;;  %v337_v27 = vld [vmem:[#allocation5 + $0x160] sm:$0xff]  ;;  %v340_v29 = vld [vmem:[#allocation5 + $0x178] sm:$0xff] }
  0x63   :  { %1571 = vmatprep.subr.bf16.mxu0 %v1570_v39  ;;  %v348_v39 = vld [vmem:[#allocation5 + $0x1b8] sm:$0xff]  ;;  %v393_v28 = vld [vmem:[#allocation5 + $0x320] sm:$0xff]  ;;  %v391_v32 = vld [vmem:[#allocation5 + $0x310] sm:$0xff] }
  0x64   :  { %v1594_v46 = vpack.c.bf16 %v351_v40, %v348_v39  ;;  %v394_v34 = vld [vmem:[#allocation5 + $0x328] sm:$0xff]  ;;  %v118_v39 = vld [vmem:[%s2175_s2] sm:$0x7]  ;;  %v399_v49 = vld [vmem:[#allocation5 + $0x350] sm:$0xff] }
  0x65   :  { %1661 = vmatpush3.bf16.msra.mxu1 %v1660_v56  ;;  %v360_v56 = vld [vmem:[#allocation5 + $0x218] sm:$0xff]  ;;  %v1686_v35 = vpack.c.bf16 %v394_v34, %v391_v32  ;;  %v403_v3 = vld [vmem:[#allocation5 + $0x370] sm:$0xff]  ;;  %v406_v4 = vld [vmem:[#allocation5 + $0x388] sm:$0xff] }
  0x66   :  { %1573 = vmatpush1.bf16.msra.mxu0 %v1572_v48  ;;  %1663 = vmatprep.subr.bf16.mxu1 %v1662_v57  ;;  %v350_v48 = vld [vmem:[#allocation5 + $0x1c8] sm:$0xff]  ;;  %v363_v57 = vld [vmem:[#allocation5 + $0x230] sm:$0xff]  ;;  %v413_v34 = vld [vmem:[#allocation5 + $0x3c0] sm:$0xff] }
  0x67   :  { %1575 = vmatprep.subr.bf16.mxu0 %v1574_v51  ;;  %v1680_v51 = vpack.c.bf16 %v334_v44, %v331_v43  ;;  %v1596_v52 = vpack.c.bf16 %v350_v48, %v347_v47  ;;  %v1602_v59 = vpack.c.bf16 %v363_v57, %v360_v56  ;;  %v389_v44 = vld [vmem:[#allocation5 + $0x300] sm:$0xff]  ;;  %v392_v47 = vld [vmem:[#allocation5 + $0x318] sm:$0xff] }
  0x68   :  { %v396_v48 = vld [vmem:[#allocation5 + $0x338] sm:$0xff]  ;;  %v1624_v54 = vpack.c.bf16 %v392_v47, %v389_v44  ;;  %v426_v47 = vld [vmem:[#allocation5 + $0x428] sm:$0xff] }
  0x69   :  { %1665 = vmatpush3.bf16.msra.mxu1 %v1664_v5  ;;  %v372_v5 = vld [vmem:[#allocation5 + $0x278] sm:$0xff]  ;;  %v1626_v55 = vpack.c.bf16 %v399_v49, %v396_v48  ;;  %v429_v48 = vld [vmem:[#allocation5 + $0x440] sm:$0xff]  ;;  %v427_v49 = vld [vmem:[#allocation5 + $0x430] sm:$0xff] }
  0x6a   :  { %1577 = vmatpush1.bf16.msra.mxu0 %v1576_v60  ;;  %1667 = vmatprep.subr.bf16.mxu1 %v1666_v6  ;;  %v359_v60 = vld [vmem:[#allocation5 + $0x210] sm:$0xff] }
  0x6b   :  { %1579 = vmatprep.subr.bf16.mxu0 %v1578_v63  ;;  %v369_v63 = vld [vmem:[#allocation5 + $0x260] sm:$0xff]  ;;  %v1604_v1 = vpack.c.bf16 %v362_v61, %v359_v60  ;;  %v375_v6 = vld [vmem:[#allocation5 + $0x290] sm:$0xff]  ;;  %v398_v60 = vld [vmem:[#allocation5 + $0x348] sm:$0xff] }
  0x6c   :  { %v1606_v2 = vpack.c.bf16 %v369_v63, %v366_v62  ;;  %v1610_v8 = vpack.c.bf16 %v375_v6, %v372_v5  ;;  %v402_v61 = vld [vmem:[#allocation5 + $0x368] sm:$0xff] }
  0x6d   :  { %1669 = vmatpush3.bf16.msra.mxu1 %v1668_v17  ;;  %v1616_v17 = vpack.c.bf16 %v380_v16, %v377_v15  ;;  %v411_v15 = vld [vmem:[#allocation5 + $0x3b0] sm:$0xff]  ;;  %v409_v16 = vld [vmem:[#allocation5 + $0x3a0] sm:$0xff] }
  0x6e   :  { %1581 = vmatpush1.bf16.msra.mxu0 %v1580_v9  ;;  %1671 = vmatprep.subr.bf16.mxu1 %v1670_v18  ;;  %v371_v9 = vld [vmem:[#allocation5 + $0x270] sm:$0xff]  ;;  %v384_v18 = vld [vmem:[#allocation5 + $0x2d8] sm:$0xff] }
  0x6f   :  { %1583 = vmatprep.subr.bf16.mxu0 %v1582_v12  ;;  %v381_v12 = vld [vmem:[#allocation5 + $0x2c0] sm:$0xff]  ;;  %v1612_v13 = vpack.c.bf16 %v374_v10, %v371_v9  ;;  %v1694_v10 = vpack.c.bf16 %v406_v4, %v403_v3  ;;  %v765_v3 = vld [vmem:[#allocation7 + $0x8] sm:$0xff] }
  0x70   :  { %v1614_v14 = vpack.c.bf16 %v381_v12, %v378_v11  ;;  %v401_v11 = vld [vmem:[#allocation5 + $0x360] sm:$0xff]  ;;  %v404_v12 = vld [vmem:[#allocation5 + $0x378] sm:$0xff] }
  0x71   :  { %1673 = vmatpush3.bf16.msra.mxu1 %v1672_v30  ;;  %v1684_v30 = vpack.c.bf16 %v340_v29, %v337_v27  ;;  %v417_v27 = vld [vmem:[#allocation5 + $0x3e0] sm:$0xff]  ;;  %v415_v29 = vld [vmem:[#allocation5 + $0x3d0] sm:$0xff] }
  0x72   :  { %1585 = vmatpush1.bf16.msra.mxu0 %v1584_v21  ;;  %1675 = vmatprep.subr.bf16.mxu1 %v1674_v31  ;;  %v1618_v21 = vpack.c.bf16 %v387_v19, %v384_v18  ;;  %v390_v31 = vld [vmem:[#allocation5 + $0x308] sm:$0xff]  ;;  %v1632_v19 = vpack.c.bf16 %v404_v12, %v401_v11  ;;  %v768_v4 = vld [vmem:[#allocation7 + $0x20] sm:$0xff]  ;;  %v774_v11 = vld [vmem:[#allocation7 + $0x50] sm:$0xff] }
  0x73   :  { %1587 = vmatprep.subr.bf16.mxu0 %v1586_v24  ;;  %v386_v24 = vld [vmem:[#allocation5 + $0x2e8] sm:$0xff] }
  0x74   :  { %v1620_v26 = vpack.c.bf16 %v386_v24, %v383_v23  ;;  %v407_v23 = vld [vmem:[#allocation5 + $0x390] sm:$0xff]  ;;  %v410_v24 = vld [vmem:[#allocation5 + $0x3a8] sm:$0xff] }
  0x75   :  { %1677 = vmatpush3.bf16.msra.mxu1 %v1676_v41 }
  0x76   :  { %1589 = vmatpush1.bf16.msra.mxu0 %v1588_v33  ;;  %1679 = vmatprep.subr.bf16.mxu1 %v1678_v42  ;;  %v1622_v33 = vpack.c.bf16 %v393_v28, %v390_v31  ;;  %v1636_v28 = vpack.c.bf16 %v410_v24, %v407_v23  ;;  %v783_v23 = vld [vmem:[#allocation7 + $0x98] sm:$0xff]  ;;  %v786_v24 = vld [vmem:[#allocation7 + $0xb0] sm:$0xff] }
  0x77   :  { %1591 = vmatprep.subr.bf16.mxu0 %v1590_v36  ;;  %v120_v36 = vlaneseq }
  0x79   :  { %1681 = vmatpush3.bf16.msra.mxu1 %v1680_v51  ;;  %v121_v37 = vshrl.u32 %v120_v36, 7  ;;  %v397_v51 = vld [vmem:[#allocation5 + $0x340] sm:$0xff]  ;;  %v420_v36 = vld [vmem:[#allocation5 + $0x3f8] sm:$0xff] }
  0x7a   :  { %1593 = vmatpush1.bf16.msra.mxu0 %v1592_v45  ;;  %1683 = vmatprep.subr.bf16.mxu1 %v1682_v25  ;;  %v414_v25 = vld [vmem:[#allocation5 + $0x3c8] sm:$0xff] }
  0x7b   :  { %1595 = vmatprep.subr.bf16.mxu0 %v1594_v46  ;;  %v2106_v38 = vsub.s32 0, %v121_v37  ;;  %v2111_v40 = vsub.s32 1, %v121_v37  ;;  %v1638_v32 = vpack.c.bf16 %v417_v27, %v414_v25  ;;  %v1730_v27 = vpack.c.bf16 %v786_v24, %v783_v23  ;;  %v824_v23 = vld [vmem:[#allocation7 + $0x1e0] sm:$0xff] }
  0x7d   :  { %1685 = vmatpush3.bf16.msra.mxu1 %v1684_v30  ;;  %v123_v41 = vrot.slane %v118_v39, %v2106_v38  ;;  %v127_v42 = vrot.slane %v118_v39, %v2111_v40  ;;  %v418_v30 = vld [vmem:[#allocation5 + $0x3e8] sm:$0xff] }
  0x7e   :  { %1597 = vmatpush1.bf16.msra.mxu0 %v1596_v52  ;;  %1687 = vmatprep.subr.bf16.mxu1 %v1686_v35  ;;  %v400_v52 = vld [vmem:[#allocation5 + $0x358] sm:$0xff] }
  0x7f   :  { %1599 = vmatprep.subr.bf16.mxu0 %v1598_v53 }
  0x82   :  { %1601 = vmatpush1.bf16.msra.mxu0 %v1600_v58  ;;  %v1690_v58 = vpack.c.bf16 %v400_v52, %v397_v51  ;;  %v1646_v52 = vpack.c.bf16 %v429_v48, %v426_v47  ;;  %v800_v47 = vld [vmem:[#allocation7 + $0x120] sm:$0xff]  ;;  %v803_v48 = vld [vmem:[#allocation7 + $0x138] sm:$0xff] }
  0x83   :  { %1603 = vmatprep.subr.bf16.mxu0 %v1602_v59  ;;  %v395_v59 = vld [vmem:[#allocation5 + $0x330] sm:$0xff] }
  0x86   :  { %1605 = vmatpush1.bf16.msra.mxu0 %v1604_v1  ;;  %v2115_v1 = vsub.s32 2, %v121_v37  ;;  %v423_v37 = vld [vmem:[#allocation5 + $0x410] sm:$0xff] }
  0x87   :  { %1607 = vmatprep.subr.bf16.mxu0 %v1606_v2  ;;  %v405_v2 = vld [vmem:[#allocation5 + $0x380] sm:$0xff] }
  0x88   :  { %v1630_v9 = vpack.c.bf16 %v405_v2, %v402_v61  ;;  %v434_v2 = vld [vmem:[#allocation5 + $0x468] sm:$0xff] }
  0x8a   :  { %1609 = vmatpush1.bf16.msra.mxu0 %v1608_v7  ;;  %v1628_v7 = vpack.c.bf16 %v398_v60, %v395_v59  ;;  %v436_v59 = vld [vmem:[#allocation5 + $0x478] sm:$0xff] }
  0x8b   :  { %1611 = vmatprep.subr.bf16.mxu0 %v1610_v8 }
  0x8e   :  { %1613 = vmatpush1.bf16.msra.mxu0 %v1612_v13  ;;  %v408_v13 = vld [vmem:[#allocation5 + $0x398] sm:$0xff] }
  0x8f   :  { %1615 = vmatprep.subr.bf16.mxu0 %v1614_v14  ;;  %v2118_v14 = vrot.slane %v118_v39, %v2115_v1  ;;  %v421_v39 = vld [vmem:[#allocation5 + $0x400] sm:$0xff] }
  0x92   :  { %1617 = vmatpush1.bf16.msra.mxu0 %v1616_v17  ;;  %v412_v17 = vld [vmem:[#allocation5 + $0x3b8] sm:$0xff] }
  0x93   :  { %1619 = vmatprep.subr.bf16.mxu0 %v1618_v21  ;;  %v1634_v21 = vpack.c.bf16 %v411_v15, %v408_v13  ;;  %v1698_v22 = vpack.c.bf16 %v412_v17, %v409_v16  ;;  %v770_v16 = vld [vmem:[#allocation7 + $0x30] sm:$0xff]  ;;  %v773_v17 = vld [vmem:[#allocation7 + $0x48] sm:$0xff] }
  0x96   :  { %1621 = vmatpush1.bf16.msra.mxu0 %v1620_v26 }
  0x97   :  { %1623 = vmatprep.subr.bf16.mxu0 %v1622_v33  ;;  %v1702_v33 = vpack.c.bf16 %v418_v30, %v415_v29  ;;  %v782_v29 = vld [vmem:[#allocation7 + $0x90] sm:$0xff]  ;;  %v785_v30 = vld [vmem:[#allocation7 + $0xa8] sm:$0xff] }
 0x12c   :  { %v201_v43 = vpop.f32.mrb[0].mxu0 }
 0x12d   :  { %v202_v45 = vadd.f32 %v201_v43, %v123_v41  ;;  %v203_v46 = vpop.f32.mrb[1].mxu0  ;;  %v1642_v43 = vpack.c.bf16 %v423_v37, %v420_v36  ;;  %v798_v36 = vld [vmem:[#allocation7 + $0x110] sm:$0xff] }
 0x12e   :  { %v204_v50 = vadd.f32 %v203_v46, %v127_v42  ;;  %v422_v46 = vld [vmem:[#allocation5 + $0x408] sm:$0xff] }
 0x12f   :  { %v287_v57 = vmax.f32 %v202_v45, 0.0  ;;  %v419_v45 = vld [vmem:[#allocation5 + $0x3f0] sm:$0xff] }
 0x130   :  { %v288_v53 = vmax.f32 %v204_v50, 0.0  ;;  %v207_v56 = vpop.f32.mrb[2].mxu0  ;;  %v430_v50 = vld [vmem:[#allocation5 + $0x448] sm:$0xff]  ;;  %v1644_v51 = vpack.c.bf16 %v422_v46, %v419_v45 }
 0x131   :  { %v208_v62 = vadd.f32 %v207_v56, %v123_v41  ;;  %v209_v63 = vpop.f32.mrb[3].mxu0  ;;  %v424_v41 = vld [vmem:[#allocation5 + $0x418] sm:$0xff] }
 0x132   :  { %518 = vmatprep.mubr.f32.mxu0 %v288_v53  ;;  %672 = vmatprep.mubr.f32.mxu1 %v288_v53  ;;  %v210_v5 = vadd.f32 %v209_v63, %v127_v42  ;;  %v1706_v44 = vpack.c.bf16 %v424_v41, %v421_v39  ;;  %v1710_v53 = vpack.c.bf16 %v430_v50, %v427_v49  ;;  %v432_v56 = vld [vmem:[#allocation5 + $0x458] sm:$0xff]  ;;  %v431_v63 = vld [vmem:[#allocation5 + $0x450] sm:$0xff] }
 0x133   :  { %519 = vmatmul.mubr.f32.vlgmr.msra.gmra.mrb[4].mxu0 %v287_v57  ;;  %673 = vmatmul.mubr.f32.vlgmr.msra.gmra.mrb[2].mxu1 %v287_v57  ;;  %v290_v6 = vmax.f32 %v208_v62, 0.0  ;;  %v2120_v18 = vpop.f32.mrb[0].mxu1  ;;  %v435_v57 = vld [vmem:[#allocation5 + $0x470] sm:$0xff]  ;;  %v1744_v49 = vpack.c.bf16 %v803_v48, %v800_v47  ;;  %v807_v50 = vld [vmem:[#allocation7 + $0x158] sm:$0xff]  ;;  %v836_v48 = vld [vmem:[#allocation7 + $0x240] sm:$0xff] }
 0x134   :  { %1625 = vmatpush1.bf16.msra.mxu0 %v1624_v54  ;;  %1689 = vmatpush3.bf16.msra.mxu1 %v1686_v35  ;;  %v291_v8 = vmax.f32 %v210_v5, 0.0  ;;  %v278_v20 = vpop.f32.mrb[1].mxu1  ;;  %v416_v35 = vld [vmem:[#allocation5 + $0x3d8] sm:$0xff]  ;;  %v425_v54 = vld [vmem:[#allocation5 + $0x420] sm:$0xff]  ;;  %v1650_v61 = vpack.c.bf16 %v435_v57, %v432_v56  ;;  %v284_v5 = vadd.f32 %v2120_v18, %v2118_v14  ;;  %v1724_v18 = vpack.c.bf16 %v773_v17, %v770_v16  ;;  %v794_v41 = vld [vmem:[#allocation7 + $0xf0] sm:$0xff] }
 0x135   :  { %1627 = vmatprep.subr.bf16.mxu0 %v1626_v55  ;;  %1691 = vmatprep.subr.bf16.mxu1 %v1690_v58  ;;  %v2123_v26 = vadd.f32 %v278_v20, %v2118_v14  ;;  %v1640_v42 = vpack.c.bf16 %v416_v35, %v413_v34  ;;  %v428_v55 = vld [vmem:[#allocation5 + $0x438] sm:$0xff]  ;;  %v780_v14 = vld [vmem:[#allocation7 + $0x80] sm:$0xff]  ;;  %v813_v56 = vld [vmem:[#allocation7 + $0x188] sm:$0xff] }
 0x136   :  { %677 = vmatprep.mubr.f32.mxu1 %v291_v8  ;;  %524 = vmatprep.mubr.f32.mxu0 %v291_v8  ;;  %v1648_v60 = vpack.c.bf16 %v428_v55, %v425_v54  ;;  %v764_v8 = vld [vmem:[#allocation7] sm:$0xff]  ;;  %v292_v12 = vmax.f32 %v284_v5, 0.0  ;;  %v791_v34 = vld [vmem:[#allocation7 + $0xd8] sm:$0xff]  ;;  %v809_v54 = vld [vmem:[#allocation7 + $0x168] sm:$0xff] }
 0x137   :  { %678 = vmatmul.mubr.f32.gmra.mrb[4].mxu1 %v290_v6  ;;  %525 = vmatmul.mubr.f32.gmra.mrb[6].mxu0 %v290_v6  ;;  %v289_v31 = vmax.f32 %v2123_v26, 0.0  ;;  %v1652_v6 = vpack.c.bf16 %v434_v2, %v431_v63  ;;  %v789_v26 = vld [vmem:[#allocation7 + $0xc8] sm:$0xff]  ;;  %v795_v35 = vld [vmem:[#allocation7 + $0xf8] sm:$0xff]  ;;  %v816_v57 = vld [vmem:[#allocation7 + $0x1a0] sm:$0xff] }
 0x138   :  { %1629 = vmatpush1.bf16.msra.mxu0 %v1628_v7  ;;  %1693 = vmatpush3.bf16.msra.mxu1 %v1690_v58  ;;  %v433_v58 = vld [vmem:[#allocation5 + $0x460] sm:$0xff]  ;;  %v1718_v7 = vpack.c.bf16 %v768_v4, %v765_v3  ;;  %v1738_v39 = vpack.c.bf16 %v798_v36, %v795_v35  ;;  %v766_v3 = vld [vmem:[#allocation7 + $0x10] sm:$0xff]  ;;  %v769_v4 = vld [vmem:[#allocation7 + $0x28] sm:$0xff] }
 0x139   :  { %1631 = vmatprep.subr.bf16.mxu0 %v1630_v9  ;;  %1695 = vmatprep.subr.bf16.mxu1 %v1694_v10  ;;  %v1714_v62 = vpack.c.bf16 %v436_v59, %v433_v58  ;;  %v767_v9 = vld [vmem:[#allocation7 + $0x18] sm:$0xff]  ;;  %v814_v58 = vld [vmem:[#allocation7 + $0x190] sm:$0xff]  ;;  %v1750_v59 = vpack.c.bf16 %v816_v57, %v813_v56  ;;  %v833_v35 = vld [vmem:[#allocation7 + $0x228] sm:$0xff] }
 0x13a   :  { %595 = vmatprep.mubr.f32.mxu0 %v2000_v0  ;;  %1456 = vmatprep.mubr.f32.mxu1 %v289_v31  ;;  %v1720_v13 = vpack.c.bf16 %v767_v9, %v764_v8  ;;  %v819_v5 = vld [vmem:[#allocation7 + $0x1b8] sm:$0xff]  ;;  %v820_v8 = vld [vmem:[#allocation7 + $0x1c0] sm:$0xff] }
 0x13b   :  { %v823_v9 = vld [vmem:[#allocation7 + $0x1d8] sm:$0xff]  ;;  %v844_v56 = vld [vmem:[#allocation7 + $0x280] sm:$0xff] }
 0x13c   :  { %1633 = vmatpush1.bf16.msra.mxu0 %v1632_v19  ;;  %1697 = vmatpush3.bf16.msra.mxu1 %v1694_v10  ;;  %v771_v10 = vld [vmem:[#allocation7 + $0x38] sm:$0xff]  ;;  %v777_v19 = vld [vmem:[#allocation7 + $0x68] sm:$0xff] }
 0x13d   :  { %1635 = vmatprep.subr.bf16.mxu0 %v1634_v21  ;;  %1699 = vmatprep.subr.bf16.mxu1 %v1698_v22  ;;  %v1722_v15 = vpack.c.bf16 %v774_v11, %v771_v10  ;;  %v1726_v20 = vpack.c.bf16 %v780_v14, %v777_v19  ;;  %v776_v21 = vld [vmem:[#allocation7 + $0x60] sm:$0xff]  ;;  %v1818_v11 = vpack.c.bf16 %v823_v9, %v820_v8  ;;  %v775_v17 = vld [vmem:[#allocation7 + $0x58] sm:$0xff]  ;;  %v825_v19 = vld [vmem:[#allocation7 + $0x1e8] sm:$0xff] }
 0x13e   :  { %v828_v14 = vld [vmem:[#allocation7 + $0x200] sm:$0xff]  ;;  %v847_v57 = vld [vmem:[#allocation7 + $0x298] sm:$0xff] }
 0x140   :  { %1637 = vmatpush1.bf16.msra.mxu0 %v1636_v28  ;;  %1701 = vmatpush3.bf16.msra.mxu1 %v1698_v22  ;;  %v779_v22 = vld [vmem:[#allocation7 + $0x78] sm:$0xff]  ;;  %v1732_v28 = vpack.c.bf16 %v785_v30, %v782_v29  ;;  %v781_v29 = vld [vmem:[#allocation7 + $0x88] sm:$0xff] }
 0x141   :  { %1639 = vmatprep.subr.bf16.mxu0 %v1638_v32  ;;  %1703 = vmatprep.subr.bf16.mxu1 %v1702_v33  ;;  %v1728_v25 = vpack.c.bf16 %v779_v22, %v776_v21  ;;  %v826_v21 = vld [vmem:[#allocation7 + $0x1f0] sm:$0xff]  ;;  %v829_v22 = vld [vmem:[#allocation7 + $0x208] sm:$0xff]  ;;  %v831_v30 = vld [vmem:[#allocation7 + $0x218] sm:$0xff] }
 0x142   :  { %v1822_v24 = vpack.c.bf16 %v829_v22, %v826_v21  ;;  %v859_v22 = vld [vmem:[#allocation7 + $0x2f8] sm:$0xff] }
 0x144   :  { %1641 = vmatpush1.bf16.msra.mxu0 %v1640_v42  ;;  %1705 = vmatpush3.bf16.msra.mxu1 %v1702_v33  ;;  %v788_v33 = vld [vmem:[#allocation7 + $0xc0] sm:$0xff]  ;;  %v797_v42 = vld [vmem:[#allocation7 + $0x108] sm:$0xff] }
 0x145   :  { %1643 = vmatprep.subr.bf16.mxu0 %v1642_v43  ;;  %1707 = vmatprep.subr.bf16.mxu1 %v1706_v44  ;;  %v1736_v37 = vpack.c.bf16 %v791_v34, %v788_v33  ;;  %v801_v43 = vld [vmem:[#allocation7 + $0x128] sm:$0xff]  ;;  %v1740_v45 = vpack.c.bf16 %v797_v42, %v794_v41  ;;  %v835_v33 = vld [vmem:[#allocation7 + $0x238] sm:$0xff]  ;;  %v830_v34 = vld [vmem:[#allocation7 + $0x210] sm:$0xff] }
 0x146   :  { %v787_v41 = vld [vmem:[#allocation7 + $0xb8] sm:$0xff]  ;;  %v837_v42 = vld [vmem:[#allocation7 + $0x248] sm:$0xff] }
 0x148   :  { %1645 = vmatpush1.bf16.msra.mxu0 %v1644_v51  ;;  %1709 = vmatpush3.bf16.msra.mxu1 %v1706_v44  ;;  %v804_v44 = vld [vmem:[#allocation7 + $0x140] sm:$0xff]  ;;  %v810_v51 = vld [vmem:[#allocation7 + $0x170] sm:$0xff] }
 0x149   :  { %1647 = vmatprep.subr.bf16.mxu0 %v1646_v52  ;;  %1711 = vmatprep.subr.bf16.mxu1 %v1710_v53  ;;  %v1742_v46 = vpack.c.bf16 %v804_v44, %v801_v43  ;;  %v1746_v52 = vpack.c.bf16 %v810_v51, %v807_v50  ;;  %v840_v43 = vld [vmem:[#allocation7 + $0x260] sm:$0xff]  ;;  %v838_v44 = vld [vmem:[#allocation7 + $0x250] sm:$0xff] }
 0x14a   :  { %v1766_v50 = vpack.c.bf16 %v840_v43, %v837_v42 }
 0x14c   :  { %1649 = vmatpush1.bf16.msra.mxu0 %v1648_v60  ;;  %1713 = vmatpush3.bf16.msra.mxu1 %v1710_v53  ;;  %v806_v53 = vld [vmem:[#allocation7 + $0x150] sm:$0xff]  ;;  %v817_v60 = vld [vmem:[#allocation7 + $0x1a8] sm:$0xff] }
 0x14d   :  { %1651 = vmatprep.subr.bf16.mxu0 %v1650_v61  ;;  %1715 = vmatprep.subr.bf16.mxu1 %v1714_v62  ;;  %v1748_v55 = vpack.c.bf16 %v809_v54, %v806_v53  ;;  %v812_v61 = vld [vmem:[#allocation7 + $0x180] sm:$0xff]  ;;  %v1814_v63 = vpack.c.bf16 %v817_v60, %v814_v58  ;;  %v793_v53 = vld [vmem:[#allocation7 + $0xe8] sm:$0xff]  ;;  %v843_v54 = vld [vmem:[#allocation7 + $0x278] sm:$0xff] }
 0x14e   :  { %v842_v60 = vld [vmem:[#allocation7 + $0x270] sm:$0xff] }
 0x150   :  { %1653 = vmatpush1.bf16.msra.mxu0 %v1652_v6  ;;  %1717 = vmatpush3.bf16.msra.mxu1 %v1714_v62  ;;  %v815_v62 = vld [vmem:[#allocation7 + $0x198] sm:$0xff]  ;;  %v1816_v6 = vpack.c.bf16 %v769_v4, %v766_v3  ;;  %v849_v4 = vld [vmem:[#allocation7 + $0x2a8] sm:$0xff] }
 0x151   :  { %1719 = vmatprep.subr.bf16.mxu1 %v1718_v7  ;;  %v1752_v2 = vpack.c.bf16 %v815_v62, %v812_v61  ;;  %v822_v7 = vld [vmem:[#allocation7 + $0x1d0] sm:$0xff]  ;;  %1815 = vmatprep.subr.bf16.mxu0 %v1814_v63  ;;  %v845_v61 = vld [vmem:[#allocation7 + $0x288] sm:$0xff]  ;;  %v1834_v63 = vpack.c.bf16 %v847_v57, %v844_v56  ;;  %v799_v3 = vld [vmem:[#allocation7 + $0x118] sm:$0xff] }
 0x152   :  { %v1754_v10 = vpack.c.bf16 %v822_v7, %v819_v5  ;;  %v852_v5 = vld [vmem:[#allocation7 + $0x2c0] sm:$0xff]  ;;  %v853_v7 = vld [vmem:[#allocation7 + $0x2c8] sm:$0xff]  ;;  %v1772_v8 = vpack.c.bf16 %v845_v61, %v842_v60  ;;  %v863_v57 = vld [vmem:[#allocation7 + $0x318] sm:$0xff] }
 0x153   :  { %596 = vmatmul.mubr.f32.vlgmr.msra.gmra.mrb[4].mxu0 %v289_v31  ;;  %1457 = vmatmul.mubr.f32.vlgmr.msra.gmra.mrb[6].mxu1 %v292_v12  ;;  %v792_v31 = vld [vmem:[#allocation7 + $0xe0] sm:$0xff]  ;;  %v870_v61 = vld [vmem:[#allocation7 + $0x350] sm:$0xff] }
 0x154   :  { %601 = vmatprep.mubr.f32.mxu0 %v2000_v0  ;;  %1721 = vmatpush1.bf16.msra.mxu1 %v1720_v13  ;;  %v1734_v32 = vpack.c.bf16 %v792_v31, %v789_v26  ;;  %v821_v13 = vld [vmem:[#allocation7 + $0x1c8] sm:$0xff]  ;;  %v834_v26 = vld [vmem:[#allocation7 + $0x230] sm:$0xff]  ;;  %v832_v31 = vld [vmem:[#allocation7 + $0x220] sm:$0xff] }
 0x155   :  { %1723 = vmatprep.subr.bf16.mxu1 %v1722_v15  ;;  %v772_v15 = vld [vmem:[#allocation7 + $0x40] sm:$0xff]  ;;  %1817 = vmatpush3.bf16.msra.mxu0 %v1816_v6  ;;  %v1762_v36 = vpack.c.bf16 %v834_v26, %v831_v30  ;;  %v850_v6 = vld [vmem:[#allocation7 + $0x2b0] sm:$0xff]  ;;  %v811_v30 = vld [vmem:[#allocation7 + $0x178] sm:$0xff] }
 0x156   :  { %1819 = vmatprep.subr.bf16.mxu0 %v1818_v11  ;;  %v1774_v11 = vpack.c.bf16 %v852_v5, %v849_v4  ;;  %v860_v56 = vld [vmem:[#allocation7 + $0x300] sm:$0xff] }
 0x157   :  { %602 = vmatmul.mubr.f32.gmra.mrb[6].mxu0 %v292_v12  ;;  %v818_v12 = vld [vmem:[#allocation7 + $0x1b0] sm:$0xff]  ;;  %v1784_v4 = vpack.c.bf16 %v863_v57, %v860_v56  ;;  %v900_v56 = vld [vmem:[#allocation7 + $0x440] sm:$0xff] }
 0x158   :  { %1725 = vmatpush1.bf16.msra.mxu1 %v1724_v18  ;;  %v1756_v16 = vpack.c.bf16 %v821_v13, %v818_v12  ;;  %v1820_v18 = vpack.c.bf16 %v775_v17, %v772_v15  ;;  %v1838_v12 = vpack.c.bf16 %v853_v7, %v850_v6  ;;  %v851_v13 = vld [vmem:[#allocation7 + $0x2b8] sm:$0xff]  ;;  %v802_v15 = vld [vmem:[#allocation7 + $0x130] sm:$0xff] }
 0x159   :  { %1727 = vmatprep.subr.bf16.mxu1 %v1726_v20  ;;  %v1758_v20 = vpack.c.bf16 %v828_v14, %v825_v19  ;;  %v855_v14 = vld [vmem:[#allocation7 + $0x2d8] sm:$0xff]  ;;  %v898_v57 = vld [vmem:[#allocation7 + $0x430] sm:$0xff] }
 0x15a   :  { %1821 = vmatpush3.bf16.msra.mxu0 %v1820_v18  ;;  %v858_v18 = vld [vmem:[#allocation7 + $0x2f0] sm:$0xff] }
 0x15b   :  { %1823 = vmatprep.subr.bf16.mxu0 %v1822_v24  ;;  %v1778_v21 = vpack.c.bf16 %v858_v18, %v855_v14  ;;  %v857_v24 = vld [vmem:[#allocation7 + $0x2e8] sm:$0xff] }
 0x15c   :  { %1729 = vmatpush1.bf16.msra.mxu1 %v1728_v25  ;;  %v827_v25 = vld [vmem:[#allocation7 + $0x1f8] sm:$0xff] }
 0x15d   :  { %1731 = vmatprep.subr.bf16.mxu1 %v1730_v27  ;;  %v778_v27 = vld [vmem:[#allocation7 + $0x70] sm:$0xff] }
 0x160   :  { %1733 = vmatpush1.bf16.msra.mxu1 %v1732_v28  ;;  %v1760_v28 = vpack.c.bf16 %v827_v25, %v824_v23  ;;  %v854_v23 = vld [vmem:[#allocation7 + $0x2d0] sm:$0xff] }
 0x161   :  { %1735 = vmatprep.subr.bf16.mxu1 %v1734_v32  ;;  %v1824_v32 = vpack.c.bf16 %v781_v29, %v778_v27  ;;  %v1780_v27 = vpack.c.bf16 %v857_v24, %v854_v23  ;;  %v808_v29 = vld [vmem:[#allocation7 + $0x160] sm:$0xff]  ;;  %v879_v23 = vld [vmem:[#allocation7 + $0x398] sm:$0xff] }
 0x162   :  { %v1844_v26 = vpack.c.bf16 %v811_v30, %v808_v29  ;;  %v883_v29 = vld [vmem:[#allocation7 + $0x3b8] sm:$0xff] }
 0x163   :  { %1825 = vmatpush3.bf16.msra.mxu0 %v1824_v32  ;;  %v862_v32 = vld [vmem:[#allocation7 + $0x310] sm:$0xff] }
 0x164   :  { %1737 = vmatpush1.bf16.msra.mxu1 %v1736_v37  ;;  %v1826_v37 = vpack.c.bf16 %v835_v33, %v832_v31  ;;  %v861_v31 = vld [vmem:[#allocation7 + $0x308] sm:$0xff] }
 0x165   :  { %1739 = vmatprep.subr.bf16.mxu1 %v1738_v39  ;;  %v784_v39 = vld [vmem:[#allocation7 + $0xa0] sm:$0xff] }
 0x166   :  { %v1828_v47 = vpack.c.bf16 %v787_v41, %v784_v39  ;;  %1827 = vmatprep.subr.bf16.mxu0 %v1826_v37 }
 0x168   :  { %1741 = vmatpush1.bf16.msra.mxu1 %v1740_v45  ;;  %v841_v45 = vld [vmem:[#allocation7 + $0x268] sm:$0xff]  ;;  %1829 = vmatpush3.bf16.msra.mxu0 %v1828_v47 }
 0x169   :  { %1743 = vmatprep.subr.bf16.mxu1 %v1742_v46  ;;  %v1764_v46 = vpack.c.bf16 %v833_v35, %v830_v34  ;;  %v1830_v51 = vpack.c.bf16 %v841_v45, %v838_v44  ;;  %v865_v34 = vld [vmem:[#allocation7 + $0x328] sm:$0xff]  ;;  %v437_v44 = vld [vmem:[%s2177_s4] sm:$0x7] }
 0x16a   :  { %v1846_v35 = vpack.c.bf16 %v865_v34, %v862_v32  ;;  %v450_v45 = vrot.slane %v437_v44, %v2115_v1  ;;  %v446_v47 = vrot.slane %v437_v44, %v2111_v40  ;;  %v878_v32 = vld [vmem:[#allocation7 + $0x390] sm:$0xff]  ;;  %v885_v34 = vld [vmem:[#allocation7 + $0x3c8] sm:$0xff] }
 0x16b   :  { %1831 = vmatprep.subr.bf16.mxu0 %v1830_v51 }
 0x16c   :  { %1745 = vmatpush1.bf16.msra.mxu1 %v1744_v49  ;;  %v839_v49 = vld [vmem:[#allocation7 + $0x258] sm:$0xff] }
 0x16d   :  { %1747 = vmatprep.subr.bf16.mxu1 %v1746_v52  ;;  %v790_v52 = vld [vmem:[#allocation7 + $0xd0] sm:$0xff]  ;;  %v1768_v58 = vpack.c.bf16 %v839_v49, %v836_v48 }
 0x170   :  { %1749 = vmatpush1.bf16.msra.mxu1 %v1748_v55  ;;  %v846_v55 = vld [vmem:[#allocation7 + $0x290] sm:$0xff] }
 0x171   :  { %1751 = vmatprep.subr.bf16.mxu1 %v1750_v59  ;;  %v1832_v59 = vpack.c.bf16 %v793_v53, %v790_v52  ;;  %v1770_v62 = vpack.c.bf16 %v846_v55, %v843_v54 }
 0x173   :  { %1833 = vmatpush3.bf16.msra.mxu0 %v1832_v59 }
 0x174   :  { %1753 = vmatpush1.bf16.msra.mxu1 %v1752_v2  ;;  %v796_v2 = vld [vmem:[#allocation7 + $0x100] sm:$0xff]  ;;  %1835 = vmatprep.subr.bf16.mxu0 %v1834_v63  ;;  %v871_v63 = vld [vmem:[#allocation7 + $0x358] sm:$0xff] }
 0x175   :  { %1755 = vmatprep.subr.bf16.mxu1 %v1754_v10  ;;  %v1836_v9 = vpack.c.bf16 %v799_v3, %v796_v2  ;;  %v848_v10 = vld [vmem:[#allocation7 + $0x2a0] sm:$0xff] }
 0x176   :  { %v1776_v17 = vpack.c.bf16 %v851_v13, %v848_v10  ;;  %v866_v10 = vld [vmem:[#allocation7 + $0x330] sm:$0xff]  ;;  %v873_v13 = vld [vmem:[#allocation7 + $0x368] sm:$0xff] }
 0x177   :  { %1837 = vmatpush3.bf16.msra.mxu0 %v1836_v9 }
 0x178   :  { %1757 = vmatpush1.bf16.msra.mxu1 %v1756_v16  ;;  %v805_v16 = vld [vmem:[#allocation7 + $0x148] sm:$0xff]  ;;  %1839 = vmatprep.subr.bf16.mxu0 %v1838_v12 }
 0x179   :  { %1759 = vmatprep.subr.bf16.mxu1 %v1758_v20  ;;  %v1840_v19 = vpack.c.bf16 %v805_v16, %v802_v15  ;;  %v856_v20 = vld [vmem:[#allocation7 + $0x2e0] sm:$0xff]  ;;  %v874_v16 = vld [vmem:[#allocation7 + $0x370] sm:$0xff] }
 0x17a   :  { %v1842_v25 = vpack.c.bf16 %v859_v22, %v856_v20  ;;  %v876_v15 = vld [vmem:[#allocation7 + $0x380] sm:$0xff]  ;;  %v875_v22 = vld [vmem:[#allocation7 + $0x378] sm:$0xff] }
 0x17b   :  { %1841 = vmatpush3.bf16.msra.mxu0 %v1840_v19  ;;  %v1790_v20 = vpack.c.bf16 %v876_v15, %v873_v13 }
 0x17c   :  { %1761 = vmatpush1.bf16.msra.mxu1 %v1760_v28  ;;  %1843 = vmatprep.subr.bf16.mxu0 %v1842_v25  ;;  %v864_v28 = vld [vmem:[#allocation7 + $0x320] sm:$0xff]  ;;  %v882_v25 = vld [vmem:[#allocation7 + $0x3b0] sm:$0xff] }
 0x17d   :  { %1763 = vmatprep.subr.bf16.mxu1 %v1762_v36  ;;  %v1782_v33 = vpack.c.bf16 %v864_v28, %v861_v31  ;;  %v1794_v31 = vpack.c.bf16 %v882_v25, %v879_v23 }
 0x17f   :  { %1845 = vmatpush3.bf16.msra.mxu0 %v1844_v26 }
 0x180   :  { %1765 = vmatpush1.bf16.msra.mxu1 %v1764_v46  ;;  %1847 = vmatprep.subr.bf16.mxu0 %v1846_v35  ;;  %v442_v46 = vrot.slane %v437_v44, %v2106_v38  ;;  %v887_v44 = vld [vmem:[#allocation7 + $0x3d8] sm:$0xff] }
 0x181   :  { %1767 = vmatprep.subr.bf16.mxu1 %v1766_v50 }
 0x184   :  { %1769 = vmatpush1.bf16.msra.mxu1 %v1768_v58  ;;  %v867_v58 = vld [vmem:[#allocation7 + $0x338] sm:$0xff] }
 0x185   :  { %1771 = vmatprep.subr.bf16.mxu1 %v1770_v62  ;;  %v868_v62 = vld [vmem:[#allocation7 + $0x340] sm:$0xff] }
 0x186   :  { %v1850_v9 = vpack.c.bf16 %v871_v63, %v868_v62  ;;  %v896_v63 = vld [vmem:[#allocation7 + $0x420] sm:$0xff] }
 0x188   :  { %1773 = vmatpush1.bf16.msra.mxu1 %v1772_v8  ;;  %v1786_v8 = vpack.c.bf16 %v870_v61, %v867_v58  ;;  %v901_v58 = vld [vmem:[#allocation7 + $0x448] sm:$0xff] }
 0x189   :  { %1775 = vmatprep.subr.bf16.mxu1 %v1774_v11  ;;  %v869_v11 = vld [vmem:[#allocation7 + $0x348] sm:$0xff]  ;;  %v1870_v62 = vpack.c.bf16 %v901_v58, %v898_v57 }
 0x18a   :  { %v1788_v14 = vpack.c.bf16 %v869_v11, %v866_v10  ;;  %v902_v10 = vld [vmem:[#allocation7 + $0x450] sm:$0xff]  ;;  %v905_v11 = vld [vmem:[#allocation7 + $0x468] sm:$0xff] }
 0x18c   :  { %1777 = vmatpush1.bf16.msra.mxu1 %v1776_v17  ;;  %v877_v17 = vld [vmem:[#allocation7 + $0x388] sm:$0xff] }
 0x18d   :  { %1779 = vmatprep.subr.bf16.mxu1 %v1778_v21  ;;  %v872_v21 = vld [vmem:[#allocation7 + $0x360] sm:$0xff]  ;;  %v1854_v24 = vpack.c.bf16 %v877_v17, %v874_v16 }
 0x18e   :  { %v1792_v26 = vpack.c.bf16 %v875_v22, %v872_v21 }
 0x190   :  { %1781 = vmatpush1.bf16.msra.mxu1 %v1780_v27  ;;  %v880_v27 = vld [vmem:[#allocation7 + $0x3a0] sm:$0xff] }
 0x191   :  { %1783 = vmatprep.subr.bf16.mxu1 %v1782_v33  ;;  %v1858_v28 = vpack.c.bf16 %v883_v29, %v880_v27  ;;  %v881_v33 = vld [vmem:[#allocation7 + $0x3a8] sm:$0xff] }
 0x206   :  { %v1309_v36 = vpop.f32.mrb[2].mxu1 }
 0x207   :  { %v1310_v37 = vpop.f32.mrb[3].mxu1 }
 0x208   :  { %v1311_v39 = vadd.f32 %v1310_v37, %v1309_v36  ;;  %v886_v36 = vld [vmem:[#allocation7 + $0x3d0] sm:$0xff]  ;;  %v889_v37 = vld [vmem:[#allocation7 + $0x3e8] sm:$0xff] }
 0x20a   :  { %v1312_v41 = vpop.f32.mrb[4].mxu1  ;;  %v675_v51 = vadd.f32 %v1311_v39, %v450_v45  ;;  %v1796_v39 = vpack.c.bf16 %v881_v33, %v878_v32 }
 0x20b   :  { %v1313_v42 = vpop.f32.mrb[5].mxu1 }
 0x20c   :  { %v1314_v43 = vadd.f32 %v1313_v42, %v1312_v41  ;;  %v1862_v42 = vpack.c.bf16 %v889_v37, %v886_v36 }
 0x20e   :  { %v680_v48 = vadd.f32 %v1314_v43, %v450_v45  ;;  %v884_v43 = vld [vmem:[#allocation7 + $0x3c0] sm:$0xff]  ;;  %v891_v45 = vld [vmem:[#allocation7 + $0x3f8] sm:$0xff] }
 0x226   :  { %v597_v49 = vpop.f32.mrb[4].mxu0  ;;  %v1458_v50 = vpop.f32.mrb[6].mxu1 }
 0x227   :  { %v1878_v52 = vadd.f32 %v597_v49, %v442_v46  ;;  %v2140_v53 = vadd.f32 %v1458_v50, %v680_v48  ;;  %v599_v54 = vpop.f32.mrb[5].mxu0  ;;  %v749_v55 = vpop.f32.mrb[7].mxu1  ;;  %v895_v48 = vld [vmem:[#allocation7 + $0x418] sm:$0xff]  ;;  %v1800_v49 = vpack.c.bf16 %v887_v44, %v884_v43 }
 0x228   :  { %v1879_v59 = vadd.f32 %v599_v54, %v446_v47  ;;  %v2142_v60 = vadd.f32 %v749_v55, %v675_v51  ;;  %v893_v54 = vld [vmem:[#allocation7 + $0x408] sm:$0xff] }
 0x229   :  { %v758_v5 = vmax.f32 %v1878_v52, 0.0  ;;  %v890_v52 = vld [vmem:[#allocation7 + $0x3f0] sm:$0xff]  ;;  %v897_v55 = vld [vmem:[#allocation7 + $0x428] sm:$0xff]  ;;  %v763_v13 = vmax.f32 %v2140_v53, 0.0 }
 0x22a   :  { %v759_v2 = vmax.f32 %v1879_v59, 0.0  ;;  %v603_v3 = vpop.f32.mrb[6].mxu0  ;;  %v760_v30 = vmax.f32 %v2142_v60, 0.0  ;;  %v1804_v59 = vpack.c.bf16 %v893_v54, %v890_v52  ;;  %v1806_v61 = vpack.c.bf16 %v900_v56, %v897_v55 }
 0x22b   :  { %v1880_v6 = vadd.f32 %v603_v3, %v442_v46  ;;  %v605_v7 = vpop.f32.mrb[7].mxu0  ;;  %v894_v46 = vld [vmem:[#allocation7 + $0x410] sm:$0xff]  ;;  %v903_v3 = vld [vmem:[#allocation7 + $0x458] sm:$0xff] }
 0x22c   :  { %v1881_v12 = vadd.f32 %v605_v7, %v446_v47  ;;  %989 = vmatprep.mubr.f32.mxu1 %v759_v2  ;;  %1143 = vmatprep.mubr.f32.mxu0 %v759_v2  ;;  %v892_v47 = vld [vmem:[#allocation7 + $0x400] sm:$0xff]  ;;  %v1802_v50 = vpack.c.bf16 %v894_v46, %v891_v45  ;;  %v899_v2 = vld [vmem:[#allocation7 + $0x438] sm:$0xff] }
 0x22d   :  { %990 = vmatmul.mubr.f32.vlgmr.msra.gmra.mrb[8].mxu1 %v758_v5  ;;  %1144 = vmatmul.mubr.f32.vlgmr.msra.gmra.mrb[8].mxu0 %v758_v5  ;;  %v761_v18 = vmax.f32 %v1880_v6, 0.0  ;;  %v1866_v51 = vpack.c.bf16 %v895_v48, %v892_v47  ;;  %v904_v5 = vld [vmem:[#allocation7 + $0x460] sm:$0xff]  ;;  %v907_v6 = vld [vmem:[#allocation7 + $0x478] sm:$0xff]  ;;  %v1808_v7 = vpack.c.bf16 %v899_v2, %v896_v63 }
 0x22e   :  { %v762_v19 = vmax.f32 %v1881_v12, 0.0  ;;  %1785 = vmatpush1.bf16.msra.mxu1 %v1784_v4  ;;  %1849 = vmatpush3.bf16.msra.mxu0 %v1846_v35  ;;  %v888_v35 = vld [vmem:[#allocation7 + $0x3e0] sm:$0xff]  ;;  %v906_v4 = vld [vmem:[#allocation7 + $0x470] sm:$0xff]  ;;  %v1812_v12 = vpack.c.bf16 %v905_v11, %v902_v10 }
 0x22f   :  { %1787 = vmatprep.subr.bf16.mxu1 %v1786_v8  ;;  %1851 = vmatprep.subr.bf16.mxu0 %v1850_v9  ;;  %v1798_v41 = vpack.c.bf16 %v888_v35, %v885_v34  ;;  %v1810_v8 = vpack.c.bf16 %v906_v4, %v903_v3 }
 0x230   :  { %995 = vmatprep.mubr.f32.mxu1 %v762_v19  ;;  %1148 = vmatprep.mubr.f32.mxu0 %v762_v19 }
 0x231   :  { %996 = vmatmul.mubr.f32.gmra.mrb[10].mxu1 %v761_v18  ;;  %1149 = vmatmul.mubr.f32.gmra.mrb[10].mxu0 %v761_v18 }
 0x232   :  { %1789 = vmatpush1.bf16.msra.mxu1 %v1788_v14  ;;  %1853 = vmatpush3.bf16.msra.mxu0 %v1850_v9  ;;  %v1874_v9 = vpack.c.bf16 %v907_v6, %v904_v5 }
 0x233   :  { %1491 = vmatprep.mubr.f32.mxu0 %v760_v30  ;;  %1791 = vmatprep.subr.bf16.mxu1 %v1790_v20  ;;  %v908_v20 = vld [vmem:[%s2179_s6] sm:$0x7]  ;;  %s2001_s6 = smov [#allocation8]  }
 0x234   :  { %1855 = vmatprep.subr.bf16.mxu0 %v1854_v24  ;;  %1066 = vmatprep.mubr.f32.mxu1 %v2000_v0  ;;  %v921_v21 = vrot.slane %v908_v20, %v2115_v1  ;;  %v913_v53 = vrot.slane %v908_v20, %v2106_v38  ;;  %v917_v60 = vrot.slane %v908_v20, %v2111_v40  ;;  %s1246_s22 = sshll.u32 %s2001_s6, 4  ;;  %s1247_s22 = int_to_ptr.vmem [resolvable:$true] %s1246_s22 }
 0x235   :  { %s1967_s23 = scalar_lea.vmem %s1247_s22, 768  ;;  %p1972_p11 = scmp.lt.s32.totalorder %s1247_s22, %s1247_s22 }
 0x236   :  { %1793 = vmatpush1.bf16.msra.mxu1 %v1792_v26  ;;  %1857 = vmatpush3.bf16.msra.mxu0 %v1854_v24  ;;  %p1968_p10 = scmp.ne.s32.totalorder %s1247_s22, %s1967_s23  ;;  %p1973_p12 = scmp.lt.s32.totalorder %s1967_s23, %s1967_s23 }
 0x237   :  { %1795 = vmatprep.subr.bf16.mxu1 %v1794_v31  ;;  %1859 = vmatprep.subr.bf16.mxu0 %v1858_v28 }
 0x238   :  { %p1974_p13 = por %p1973_p12, %p1972_p11 }
 0x23a   :  { %1797 = vmatpush1.bf16.msra.mxu1 %v1796_v39  ;;  %1861 = vmatpush3.bf16.msra.mxu0 %v1858_v28  ;;  %p1975_p0 = pnand %p1974_p13, %p1968_p10 }
 0x23b   :  { %1799 = vmatprep.subr.bf16.mxu1 %v1798_v41  ;;  %1863 = vmatprep.subr.bf16.mxu0 %v1862_v42 }
 0x23e   :  { %1801 = vmatpush1.bf16.msra.mxu1 %v1800_v49  ;;  %1865 = vmatpush3.bf16.msra.mxu0 %v1862_v42 }
 0x23f   :  { %1803 = vmatprep.subr.bf16.mxu1 %v1802_v50  ;;  %1867 = vmatprep.subr.bf16.mxu0 %v1866_v51 }
 0x242   :  { %1805 = vmatpush1.bf16.msra.mxu1 %v1804_v59  ;;  %1869 = vmatpush3.bf16.msra.mxu0 %v1866_v51 }
 0x243   :  { %1807 = vmatprep.subr.bf16.mxu1 %v1806_v61  ;;  %1871 = vmatprep.subr.bf16.mxu0 %v1870_v62 }
 0x246   :  { %1809 = vmatpush1.bf16.msra.mxu1 %v1808_v7  ;;  %1873 = vmatpush3.bf16.msra.mxu0 %v1870_v62 }
 0x247   :  { %1811 = vmatprep.subr.bf16.mxu1 %v1810_v8  ;;  %1875 = vmatprep.subr.bf16.mxu0 %v1874_v9 }
 0x24a   :  { %1813 = vmatpush1.bf16.msra.mxu1 %v1812_v12  ;;  %1877 = vmatpush3.bf16.msra.mxu0 %v1874_v9 }
 0x24d   :  { %1067 = vmatmul.mubr.f32.vlgmr.msra.gmra.mrb[8].mxu1 %v760_v30  ;;  %1492 = vmatmul.mubr.f32.vlgmr.msra.gmra.mrb[12].mxu0 %v763_v13 }
 0x24e   :  { %1072 = vmatprep.mubr.f32.mxu1 %v2000_v0 }
 0x251   :  { %1073 = vmatmul.mubr.f32.gmra.mrb[10].mxu1 %v763_v13 }
 0x300   :  { %v1365_v15 = vpop.f32.mrb[8].mxu0 }
 0x301   :  { %v1366_v16 = vpop.f32.mrb[9].mxu0 }
 0x302   :  { %v1367_v17 = vadd.f32 %v1366_v16, %v1365_v15 }
 0x304   :  { %v1368_v19 = vpop.f32.mrb[10].mxu0  ;;  %v1146_v24 = vadd.f32 %v1367_v17, %v921_v21 }
 0x305   :  { %v1369_v14 = vpop.f32.mrb[11].mxu0 }
 0x306   :  { %v1370_v18 = vadd.f32 %v1369_v14, %v1368_v19 }
 0x308   :  { %v1151_v22 = vadd.f32 %v1370_v18, %v921_v21 }
 0x320   :  { %v1068_v23 = vpop.f32.mrb[8].mxu1  ;;  %v1493_v0 = vpop.f32.mrb[12].mxu0 }
 0x321   :  { %v1882_v25 = vadd.f32 %v1068_v23, %v913_v53  ;;  %v1226_v27 = vadd.f32 %v1493_v0, %v1151_v22  ;;  %v1070_v29 = vpop.f32.mrb[9].mxu1  ;;  %v1220_v30 = vpop.f32.mrb[13].mxu0 }
 0x322   :  { %v1883_v26 = vadd.f32 %v1070_v29, %v917_v60  ;;  %v1221_v31 = vadd.f32 %v1220_v30, %v1146_v24 }
 0x323   :  { %v1229_v28 = vmax.f32 %v1882_v25, 0.0  ;;  %v1234_v32 = vmax.f32 %v1226_v27, 0.0 }
 0x324   :  { %v1230_v33 = vmax.f32 %v1883_v26, 0.0  ;;  %v1231_v34 = vmax.f32 %v1221_v31, 0.0  ;;  %v1074_v35 = vpop.f32.mrb[10].mxu1 }
 0x325   :  { %1235 = vst [vmem:[#allocation8] sm:$0xff] %v1229_v28  ;;  %1240 = vst [vmem:[#allocation8 + $0x28] sm:$0xff] %v1234_v32  ;;  %v1884_v38 = vadd.f32 %v1074_v35, %v913_v53  ;;  %v1076_v1 = vpop.f32.mrb[11].mxu1 }
 0x326   :  { %1236 = vst [vmem:[#allocation8 + $0x8] sm:$0xff] %v1230_v33  ;;  %1237 = vst [vmem:[#allocation8 + $0x10] sm:$0xff] %v1231_v34  ;;  %v1885_v40 = vadd.f32 %v1076_v1, %v917_v60 }
 0x327   :  { %v1232_v36 = vmax.f32 %v1884_v38, 0.0 }
 0x328   :  { %v1233_v37 = vmax.f32 %v1885_v40, 0.0 }
 0x329   :  { %1238 = vst [vmem:[#allocation8 + $0x18] sm:$0xff] %v1232_v36 }
 0x32a   :  { %1239 = vst [vmem:[#allocation8 + $0x20] sm:$0xff] %v1233_v37 }
 0x32b   :  { %1978 = shalt.err (!%p1975_p0)
}
 0x32c   :  { %s1979_s25 = scalar_lea.hbm %s2180_s7, 768 }
 0x32d   :  { %p1980_p1 = scmp.ne.s32.totalorder %s2180_s7, %s1979_s25  ;;  %p1983_p2 = scmp.lt.u32.totalorder %s1979_s25, %s2180_s7 }
 0x32f   :  { %p1985_p3 = pnand %p1983_p2, %p1980_p1 }
 0x331   :  { %1988 = shalt.err (!%p1985_p3)
}
 0x332   :  { %1252 = dma.vmem_to_hbm [thread:$0]  %s1247_s22, 768, %s2180_s7, [#allocation4], %s1997_s13, %s1997_s13, %s1998_s14  }
 0x333   :  { %1993 = dma.done.wait [#allocation4], 768  }
 0x334   :  { %1994 = vsyncadd [#allocation4], 4294966528 }
 0x335   :  { %1256 = vsyncpa [#allocation3], 1 }
 0x336   :  { %1257 = vsyncpa [#allocation6], 1 }
 0x337   :  { %1258 = vsyncpa [#allocation4], 1 }

</bundles_post_ra>
